<compile_context>
chip_gen: v7x
topology: tpu7x:2x2x1
jax: 0.10.0
libtpu: 0.0.40
codegen_flags: <defaults>
</compile_context>

<pallas_src>
import functools

import jax
import jax.numpy as jnp
from jax.experimental import pallas as pl
from jax.experimental.pallas import tpu as pltpu

MAX_TILE = 2048                 # row-tile upper bound (sweep 1024-4096)
TILE_ALIGN = 128                # tiles stay a multiple of the packed sublane group
VMEM_LIMIT = 32 * 1024 * 1024   # headroom vs v5e's 16 MiB scoped default


def _cdiv(a, b):
    return -(-a // b)


def _round_up(a, b):
    return _cdiv(a, b) * b


def _choose_tile(n, max_tile=MAX_TILE, align=TILE_ALIGN):
    """Biggest-tile-that-fits policy with bounded zero-padding waste."""
    steps = max(1, _cdiv(n, max_tile))
    return min(max_tile, _round_up(_cdiv(n, steps), align))


# ---------------------------------------------------------------------------
# Shared fused-MLP math (used inside the Pallas kernel AND as the XLA fallback)
# ---------------------------------------------------------------------------
def _mlp_compute(x, w_slab, b_slab, row_offs, out_cols, gate_col):
    """4-layer MLP over packed weight/bias slabs.

    w_slab: (sum_i round_up(K_i, 8), W) bf16, layer i in rows [offs[i], offs[i+1])
            with zero row/col padding; b_slab: (n_layers, W) f32, zero col-padded.
    Padded weight rows are zero, so extra input columns contribute nothing and
    intermediate activations beyond a layer's true fan-out are exactly zero.
    """
    n_layers = len(row_offs) - 1
    h = x
    for li in range(n_layers):
        lo, hi = row_offs[li], row_offs[li + 1]
        h = (jnp.dot(h[:, :hi - lo].astype(w_slab.dtype), w_slab[lo:hi, :],
                     preferred_element_type=jnp.float32)
             + b_slab[li:li + 1, :])
        if li < n_layers - 1:
            h = jnp.where(h > 0, h, 0.2 * h)       # LeakyReLU(0.2), f32 on VPU
    if gate_col is not None:                       # MLP_msg: sigmoid gate (EUP)
        return h[:, :out_cols] * jax.nn.sigmoid(h[:, gate_col:gate_col + 1])
    return h[:, :out_cols]


def _mlp_kernel(row_offs, out_cols, gate_col, x_ref, w_ref, b_ref, out_ref):
    out_ref[...] = _mlp_compute(x_ref[...], w_ref[...], b_ref[...],
                                row_offs, out_cols, gate_col).astype(out_ref.dtype)


def _run_mlp(x, w_slab, b_slab, row_offs, out_cols, gate_col, *, out_dtype, tile):
    """Row-streamed pallas_call; x must already be (n_pad, k_pad) bf16."""
    n_pad, k_pad = x.shape
    kernel = functools.partial(_mlp_kernel, row_offs, out_cols, gate_col)
    return pl.pallas_call(
        kernel,
        out_shape=jax.ShapeDtypeStruct((n_pad, out_cols), out_dtype),
        grid=(n_pad // tile,),
        in_specs=[
            pl.BlockSpec((tile, k_pad), lambda i: (i, 0)),   # fused row stream
            pl.BlockSpec(w_slab.shape, lambda i: (0, 0)),    # packed weight slab
            pl.BlockSpec(b_slab.shape, lambda i: (0, 0)),    # packed bias slab
        ],
        out_specs=pl.BlockSpec((tile, out_cols), lambda i: (i, 0)),
        compiler_params=pltpu.CompilerParams(
            # TODO(synk): on v7x switch the row axis to pltpu.CORE_PARALLEL (or a
            # core_map) so tiles shard across both TensorCores; "parallel" is the
            # portable choice for single-TC v5e/v6e.
            dimension_semantics=("parallel",),
            vmem_limit_bytes=VMEM_LIMIT),
    )(x, w_slab, b_slab)


# ---------------------------------------------------------------------------
# Parameter init (PyTorch nn.Linear default U(-1/sqrt(fan_in), 1/sqrt(fan_in)))
# and one-time kernel-layout packing.
# ---------------------------------------------------------------------------
def init_mlp(key, sizes):
    params = []
    keys = jax.random.split(key, len(sizes) - 1)
    for i in range(1, len(sizes)):
        fan_in, fan_out = sizes[i - 1], sizes[i]
        bound = 1.0 / (fan_in ** 0.5)
        kw, kb = jax.random.split(keys[i - 1])
        w = jax.random.uniform(kw, (fan_in, fan_out), jnp.float32, -bound, bound)
        b = jax.random.uniform(kb, (fan_out,), jnp.float32, -bound, bound)
        params.append((w, b))
    return params


def pack_mlp_params(params):
    """Pack per-layer (w, b) into one bf16 weight slab + one f32 bias slab."""
    ws = [jnp.asarray(w, jnp.float32) for w, _ in params]
    bs = [jnp.asarray(b, jnp.float32) for _, b in params]
    width = max(_round_up(w.shape[1], 8) for w in ws)      # 32 for this module
    blocks, offs = [], [0]
    for w in ws:
        k, n = w.shape
        kp = _round_up(k, 8)                               # sublane-aligned slices
        blocks.append(jnp.zeros((kp, width), jnp.float32).at[:k, :n].set(w))
        offs.append(offs[-1] + kp)
    w_slab = jnp.concatenate(blocks, axis=0).astype(jnp.bfloat16)
    b_slab = jnp.stack([jnp.zeros((width,), jnp.float32).at[:b.shape[0]].set(b)
                        for b in bs])
    return w_slab, b_slab, tuple(offs)


def prep_msg_params(params, h1, h2):
    """MLP_msg: permute last-layer columns [k | f1 | f2] -> [f1 | f2 | k] so the
    gated (f1|f2) output slab is lane-dense from lane 0; then pack."""
    (w0, b0), (w1, b1), (w2, b2), (w3, b3) = params
    w3p = jnp.concatenate([w3[:, 1:1 + h1 + h2], w3[:, :1]], axis=1)
    b3p = jnp.concatenate([b3[1:1 + h1 + h2], b3[:1]])
    return pack_mlp_params([(w0, b0), (w1, b1), (w2, b2), (w3p, b3p)])


# ---------------------------------------------------------------------------
# Edge / node forward wrappers
# ---------------------------------------------------------------------------
def edge_msg_forward(nf, src, dst, ef, msg_params, offs, *, h1, h2, min_rows):
    w_slab, b_slab = msg_params
    n = ef.shape[0]
    in_nf, in_ef = nf.shape[1], ef.shape[1]
    k_raw = 2 * in_nf + in_ef
    k_pad = offs[1]                      # first-layer fan-in, row-padded to 8
    out_cols = h1 + h2
    gate_col = h1 + h2                   # k column sits last after the permute

    if n < min_rows:
        # Small-graph fast path: pure XLA, no pallas_call / row-pad machinery.
        x = jnp.concatenate([nf[src], nf[dst], ef], axis=1)
        x = jnp.pad(x, ((0, 0), (0, k_pad - k_raw))).astype(jnp.bfloat16)
        out = _mlp_compute(x, w_slab, b_slab, offs, out_cols, gate_col)
        return out[:, :h1], out[:, h1:]

    tile = _choose_tile(n)
    n_pad = _round_up(n, tile)
    pad = n_pad - n
    # Pad the cheap 1-D index vectors so the gathered node rows come out
    # pre-padded; the ef row/col pad fuses into the gather+concat+cast fusion
    # below -> no separate full-stream jnp.pad HBM pass.
    src_p = jnp.pad(src, (0, pad)) if pad else src
    dst_p = jnp.pad(dst, (0, pad)) if pad else dst
    ef_p = jnp.pad(ef, ((0, pad), (0, k_pad - k_raw)))
    x = jnp.concatenate([nf[src_p], nf[dst_p], ef_p], axis=1).astype(jnp.bfloat16)

    out = _run_mlp(x, w_slab, b_slab, offs, out_cols, gate_col,
                   out_dtype=jnp.bfloat16, tile=tile)   # bf16 writeback
    out = out[:n]                        # drop padded rows BEFORE scatter reductions
    return out[:, :h1], out[:, h1:]      # free slices of the lane-dense slab


def node_reduce_forward(nf, nf1, nf2, red_params, offs, *, out_nf, min_rows):
    w_slab, b_slab = red_params
    n = nf.shape[0]
    k_raw = nf.shape[1] + nf1.shape[1] + nf2.shape[1]
    k_pad = offs[1]

    if n < min_rows:
        x = jnp.concatenate([nf, nf1, nf2], axis=1)
        x = jnp.pad(x, ((0, 0), (0, k_pad - k_raw))).astype(jnp.bfloat16)
        return _mlp_compute(x, w_slab, b_slab, offs, out_nf, None)

    tile = _choose_tile(n)
    n_pad = _round_up(n, tile)
    pad = n_pad - n
    # concat + pad + bf16 cast fuse into one XLA pass producing the kernel input.
    x = jnp.concatenate([nf, nf1, nf2], axis=1)
    x = jnp.pad(x, ((0, pad), (0, k_pad - k_raw))).astype(jnp.bfloat16)
    out = _run_mlp(x, w_slab, b_slab, offs, out_nf, None,
                   out_dtype=jnp.float32, tile=tile)
    return out[:n]


# ---------------------------------------------------------------------------
# AllConv forward
# ---------------------------------------------------------------------------
def allconv_forward(msg_params, red_params, nf, src, dst, ef, *,
                    msg_offs, red_offs, h1, h2, out_nf, pallas_min_rows=512):
    num_nodes = nf.shape[0]

    # apply_edges(edge_udf): MLP_msg + sigmoid gate fused in one Pallas kernel.
    ef1, ef2 = edge_msg_forward(nf, src, dst, ef, msg_params, msg_offs,
                                h1=h1, h2=h2, min_rows=pallas_min_rows)

    # update_all(copy_e('ef1'), sum) / update_all(copy_e('ef2'), max) by dst.
    # TODO(synk): data-dependent scatter reductions kept in plain JAX.
    nf1 = jax.ops.segment_sum(ef1.astype(jnp.float32), dst, num_segments=num_nodes)
    nf2 = jax.ops.segment_max(ef2.astype(jnp.float32), dst, num_segments=num_nodes)
    deg = jax.ops.segment_sum(jnp.ones(dst.shape, jnp.float32), dst,
                              num_segments=num_nodes)
    nf2 = jnp.where(deg[:, None] > 0, nf2, 0.0)   # DGL zero-fill for 0-in-degree max

    # x = MLP_reduce(cat([nf, nf1, nf2]))
    return node_reduce_forward(nf, nf1, nf2, red_params, red_offs,
                               out_nf=out_nf, min_rows=pallas_min_rows)


# ---------------------------------------------------------------------------
# Pure-JAX f32 reference (mirrors the PyTorch module semantics exactly)
# ---------------------------------------------------------------------------
def allconv_reference(msg_raw, red_raw, nf, src, dst, ef, *, h1, h2):
    def mlp(params, x):
        h = x
        for i, (w, b) in enumerate(params):
            h = h @ w + b
            if i < len(params) - 1:
                h = jnp.where(h > 0, h, 0.2 * h)
        return h

    num_nodes = nf.shape[0]
    m = mlp(msg_raw, jnp.concatenate([nf[src], nf[dst], ef], axis=1))
    k = jax.nn.sigmoid(m[:, :1])
    ef1 = m[:, 1:1 + h1] * k
    ef2 = m[:, 1 + h1:1 + h1 + h2] * k
    nf1 = jax.ops.segment_sum(ef1, dst, num_segments=num_nodes)
    nf2 = jax.ops.segment_max(ef2, dst, num_segments=num_nodes)
    deg = jax.ops.segment_sum(jnp.ones(dst.shape, jnp.float32), dst,
                              num_segments=num_nodes)
    nf2 = jnp.where(deg[:, None] > 0, nf2, 0.0)
    return mlp(red_raw, jnp.concatenate([nf, nf1, nf2], axis=1))


# ---------------------------------------------------------------------------
if __name__ == "__main__":
    in_nf, out_nf, in_ef, h1, h2 = 4, 4, 12, 10, 10

    key = jax.random.PRNGKey(0)
    k_params, k_small, k_big = jax.random.split(key, 3)
    k_msg, k_red = jax.random.split(k_params)

    msg_raw = init_mlp(k_msg, (2 * in_nf + in_ef, 32, 32, 32, 1 + h1 + h2))
    red_raw = init_mlp(k_red, (in_nf + h1 + h2, 32, 32, 32, out_nf))
    msg_w_slab, msg_b_slab, msg_offs = prep_msg_params(msg_raw, h1, h2)
    red_w_slab, red_b_slab, red_offs = pack_mlp_params(red_raw)
    msg_params = (msg_w_slab, msg_b_slab)
    red_params = (red_w_slab, red_b_slab)

    def make_graph(gkey, num_nodes, num_edges):
        k1, k2, k3, k4 = jax.random.split(gkey, 4)
        nf = jax.random.normal(k1, (num_nodes, in_nf), jnp.float32)
        ef = jax.random.normal(k2, (num_edges, in_ef), jnp.float32)
        src = jax.random.randint(k3, (num_edges,), 0, num_nodes)
        dst = jax.random.randint(k4, (num_edges,), 0, num_nodes)
        return nf, src, dst, ef

    def run_and_check(graph, min_rows):
        nf, src, dst, ef = graph
        fwd = jax.jit(functools.partial(
            allconv_forward, h1=h1, h2=h2, out_nf=out_nf,
            msg_offs=msg_offs, red_offs=red_offs, pallas_min_rows=min_rows))
        out = jax.block_until_ready(fwd(msg_params, red_params, nf, src, dst, ef))
        ref = allconv_reference(msg_raw, red_raw, nf, src, dst, ef, h1=h1, h2=h2)
        assert out.shape == ref.shape and out.dtype == jnp.float32
        rel = float(jnp.max(jnp.abs(out - ref)) / (jnp.max(jnp.abs(ref)) + 1e-6))
        assert rel < 0.1, f"mismatch vs f32 reference: rel-max-err={rel:.4f}"
        return out

    # Small graph (module demo sizes): force the Pallas path (min_rows=0).
    run_and_check(make_graph(k_small, num_nodes=8, num_edges=16), min_rows=0)
    # Larger graph: multi-tile pipelined Pallas path with the default threshold.
    run_and_check(make_graph(k_big, num_nodes=2048, num_edges=8192), min_rows=512)

    print("KERNEL_OK")
</pallas_src>

<mosaic_0001>
module attributes {stable_mosaic.version = 11 : i64} {
  func.func private @main(%arg0: i32) attributes {dimension_semantics = [#tpu.dimension_semantics<core_parallel>], iteration_bounds = array<i64: 2>, tpu.core_type = #tpu.core_type<sc_scalar_subcore>, window_params = []} {
    return
  }
}

module attributes {stable_mosaic.version = 11 : i64} {
  func.func private @main(%arg0: i32) attributes {dimension_semantics = [#tpu.dimension_semantics<core_parallel>], iteration_bounds = array<i64: 2>, tpu.core_type = #tpu.core_type<sc_scalar_subcore>, window_params = []} {
    return
  }
}

module attributes {stable_mosaic.version = 11 : i64} {
  func.func @_mlp_kernel(%arg0: i32, %arg1: memref<128x24xbf16, #tpu.memory_space<vmem>>, %arg2: memref<120x32xbf16, #tpu.memory_space<vmem>>, %arg3: memref<4x32xf32, #tpu.memory_space<vmem>>, %arg4: memref<128x20xbf16, #tpu.memory_space<vmem>>) attributes {dimension_semantics = [#tpu.dimension_semantics<parallel>], iteration_bounds = array<i64: 1>, scalar_prefetch = 0 : i64, scratch_operands = 0 : i64, tpu.core_type = #tpu.core_type<tc>, window_params = [{transform_indices = @transform_0, window_bounds = array<i64: 128, 24>}, {pipeline_mode = #tpu.pipeline_mode<synchronous>, transform_indices = @transform_1, window_bounds = array<i64: 120, 32>}, {pipeline_mode = #tpu.pipeline_mode<synchronous>, transform_indices = @transform_2, window_bounds = array<i64: 4, 32>}, {transform_indices = @transform_3, window_bounds = array<i64: 128, 20>}]} {
    %c0 = arith.constant 0 : index
    %c0_0 = arith.constant 0 : index
    %0 = vector.load %arg1[%c0, %c0_0] : memref<128x24xbf16, #tpu.memory_space<vmem>>, vector<128x24xbf16>
    %c0_1 = arith.constant 0 : index
    %c0_2 = arith.constant 0 : index
    %1 = vector.load %arg2[%c0_1, %c0_2] : memref<120x32xbf16, #tpu.memory_space<vmem>>, vector<120x32xbf16>
    %c0_3 = arith.constant 0 : index
    %c0_4 = arith.constant 0 : index
    %2 = vector.load %arg3[%c0_3, %c0_4] : memref<4x32xf32, #tpu.memory_space<vmem>>, vector<4x32xf32>
    %3 = vector.extract_strided_slice %1 {offsets = [0, 0], sizes = [24, 32], strides = [1, 1]} : vector<120x32xbf16> to vector<24x32xbf16>
    %cst = arith.constant dense<0.000000e+00> : vector<128x32xf32>
    %4 = tpu.matmul %0, %3, %cst {dimension_numbers = #tpu.dot_dimension_numbers<[1], [0], [0], [1], [0, 0, 1, 1], [], []>} : vector<128x24xbf16>, vector<24x32xbf16>, vector<128x32xf32> -> vector<128x32xf32>
    %5 = vector.extract_strided_slice %2 {offsets = [0, 0], sizes = [1, 32], strides = [1, 1]} : vector<4x32xf32> to vector<1x32xf32>
    %6 = vector.broadcast %5 : vector<1x32xf32> to vector<128x32xf32>
    %7 = arith.addf %4, %6 : vector<128x32xf32>
    %cst_5 = arith.constant 0.000000e+00 : f32
    %8 = vector.broadcast %cst_5 : f32 to vector<128x32xf32>
    %9 = arith.cmpf ogt, %7, %8 : vector<128x32xf32>
    %cst_6 = arith.constant 2.000000e-01 : f32
    %10 = vector.broadcast %cst_6 : f32 to vector<128x32xf32>
    %11 = arith.mulf %10, %7 : vector<128x32xf32>
    %12 = arith.select %9, %7, %11 : vector<128x32xi1>, vector<128x32xf32>
    %13 = arith.truncf %12 : vector<128x32xf32> to vector<128x32xbf16>
    %14 = vector.extract_strided_slice %1 {offsets = [24, 0], sizes = [32, 32], strides = [1, 1]} : vector<120x32xbf16> to vector<32x32xbf16>
    %cst_7 = arith.constant dense<0.000000e+00> : vector<128x32xf32>
    %15 = tpu.matmul %13, %14, %cst_7 {dimension_numbers = #tpu.dot_dimension_numbers<[1], [0], [0], [1], [0, 0, 1, 1], [], []>} : vector<128x32xbf16>, vector<32x32xbf16>, vector<128x32xf32> -> vector<128x32xf32>
    %16 = vector.extract_strided_slice %2 {offsets = [1, 0], sizes = [1, 32], strides = [1, 1]} : vector<4x32xf32> to vector<1x32xf32>
    %17 = vector.broadcast %16 : vector<1x32xf32> to vector<128x32xf32>
    %18 = arith.addf %15, %17 : vector<128x32xf32>
    %cst_8 = arith.constant 0.000000e+00 : f32
    %19 = vector.broadcast %cst_8 : f32 to vector<128x32xf32>
    %20 = arith.cmpf ogt, %18, %19 : vector<128x32xf32>
    %cst_9 = arith.constant 2.000000e-01 : f32
    %21 = vector.broadcast %cst_9 : f32 to vector<128x32xf32>
    %22 = arith.mulf %21, %18 : vector<128x32xf32>
    %23 = arith.select %20, %18, %22 : vector<128x32xi1>, vector<128x32xf32>
    %24 = arith.truncf %23 : vector<128x32xf32> to vector<128x32xbf16>
    %25 = vector.extract_strided_slice %1 {offsets = [56, 0], sizes = [32, 32], strides = [1, 1]} : vector<120x32xbf16> to vector<32x32xbf16>
    %cst_10 = arith.constant dense<0.000000e+00> : vector<128x32xf32>
    %26 = tpu.matmul %24, %25, %cst_10 {dimension_numbers = #tpu.dot_dimension_numbers<[1], [0], [0], [1], [0, 0, 1, 1], [], []>} : vector<128x32xbf16>, vector<32x32xbf16>, vector<128x32xf32> -> vector<128x32xf32>
    %27 = vector.extract_strided_slice %2 {offsets = [2, 0], sizes = [1, 32], strides = [1, 1]} : vector<4x32xf32> to vector<1x32xf32>
    %28 = vector.broadcast %27 : vector<1x32xf32> to vector<128x32xf32>
    %29 = arith.addf %26, %28 : vector<128x32xf32>
    %cst_11 = arith.constant 0.000000e+00 : f32
    %30 = vector.broadcast %cst_11 : f32 to vector<128x32xf32>
    %31 = arith.cmpf ogt, %29, %30 : vector<128x32xf32>
    %cst_12 = arith.constant 2.000000e-01 : f32
    %32 = vector.broadcast %cst_12 : f32 to vector<128x32xf32>
    %33 = arith.mulf %32, %29 : vector<128x32xf32>
    %34 = arith.select %31, %29, %33 : vector<128x32xi1>, vector<128x32xf32>
    %35 = arith.truncf %34 : vector<128x32xf32> to vector<128x32xbf16>
    %36 = vector.extract_strided_slice %1 {offsets = [88, 0], sizes = [32, 32], strides = [1, 1]} : vector<120x32xbf16> to vector<32x32xbf16>
    %cst_13 = arith.constant dense<0.000000e+00> : vector<128x32xf32>
    %37 = tpu.matmul %35, %36, %cst_13 {dimension_numbers = #tpu.dot_dimension_numbers<[1], [0], [0], [1], [0, 0, 1, 1], [], []>} : vector<128x32xbf16>, vector<32x32xbf16>, vector<128x32xf32> -> vector<128x32xf32>
    %38 = vector.extract_strided_slice %2 {offsets = [3, 0], sizes = [1, 32], strides = [1, 1]} : vector<4x32xf32> to vector<1x32xf32>
    %39 = vector.broadcast %38 : vector<1x32xf32> to vector<128x32xf32>
    %40 = arith.addf %37, %39 : vector<128x32xf32>
    %41 = vector.extract_strided_slice %40 {offsets = [0, 0], sizes = [128, 20], strides = [1, 1]} : vector<128x32xf32> to vector<128x20xf32>
    %42 = vector.extract_strided_slice %40 {offsets = [0, 20], sizes = [128, 1], strides = [1, 1]} : vector<128x32xf32> to vector<128x1xf32>
    %43 = arith.negf %42 : vector<128x1xf32>
    %44 = math.exp %43 : vector<128x1xf32>
    %cst_14 = arith.constant 1.000000e+00 : f32
    %45 = vector.broadcast %cst_14 : f32 to vector<128x1xf32>
    %46 = arith.addf %45, %44 : vector<128x1xf32>
    %47 = arith.divf %45, %46 : vector<128x1xf32>
    %48 = vector.broadcast %47 : vector<128x1xf32> to vector<128x20xf32>
    %49 = arith.mulf %41, %48 : vector<128x20xf32>
    %50 = arith.truncf %49 : vector<128x20xf32> to vector<128x20xbf16>
    %c0_15 = arith.constant 0 : index
    %c0_16 = arith.constant 0 : index
    %51 = vector.load %arg4[%c0_15, %c0_16] : memref<128x20xbf16, #tpu.memory_space<vmem>>, vector<128x20xbf16>
    tpu.vector_store %arg4[%c0_15, %c0_16], %50 {strides = array<i32>} : memref<128x20xbf16, #tpu.memory_space<vmem>>, vector<128x20xbf16>,
    return
  }
  func.func @transform_0(%arg0: i32) -> (i32, i32) {
    %c0_i32 = arith.constant 0 : i32
    %c0_i32_0 = arith.constant 0 : i32
    return %arg0, %c0_i32 : i32, i32
  }
  func.func @transform_1(%arg0: i32) -> (i32, i32) {
    %c0_i32 = arith.constant 0 : i32
    %c0_i32_0 = arith.constant 0 : i32
    %c0_i32_1 = arith.constant 0 : i32
    return %c0_i32, %c0_i32_0 : i32, i32
  }
  func.func @transform_2(%arg0: i32) -> (i32, i32) {
    %c0_i32 = arith.constant 0 : i32
    %c0_i32_0 = arith.constant 0 : i32
    %c0_i32_1 = arith.constant 0 : i32
    return %c0_i32, %c0_i32_0 : i32, i32
  }
  func.func @transform_3(%arg0: i32) -> (i32, i32) {
    %c0_i32 = arith.constant 0 : i32
    %c0_i32_0 = arith.constant 0 : i32
    return %arg0, %c0_i32 : i32, i32
  }
}

module attributes {stable_mosaic.version = 11 : i64} {
  func.func @_mlp_kernel(%arg0: i32, %arg1: memref<128x24xbf16, #tpu.memory_space<vmem>>, %arg2: memref<120x32xbf16, #tpu.memory_space<vmem>>, %arg3: memref<4x32xf32, #tpu.memory_space<vmem>>, %arg4: memref<128x4xf32, #tpu.memory_space<vmem>>) attributes {dimension_semantics = [#tpu.dimension_semantics<parallel>], iteration_bounds = array<i64: 1>, scalar_prefetch = 0 : i64, scratch_operands = 0 : i64, tpu.core_type = #tpu.core_type<tc>, window_params = [{transform_indices = @transform_0, window_bounds = array<i64: 128, 24>}, {pipeline_mode = #tpu.pipeline_mode<synchronous>, transform_indices = @transform_1, window_bounds = array<i64: 120, 32>}, {pipeline_mode = #tpu.pipeline_mode<synchronous>, transform_indices = @transform_2, window_bounds = array<i64: 4, 32>}, {transform_indices = @transform_3, window_bounds = array<i64: 128, 4>}]} {
    %c0 = arith.constant 0 : index
    %c0_0 = arith.constant 0 : index
    %0 = vector.load %arg1[%c0, %c0_0] : memref<128x24xbf16, #tpu.memory_space<vmem>>, vector<128x24xbf16>
    %c0_1 = arith.constant 0 : index
    %c0_2 = arith.constant 0 : index
    %1 = vector.load %arg2[%c0_1, %c0_2] : memref<120x32xbf16, #tpu.memory_space<vmem>>, vector<120x32xbf16>
    %c0_3 = arith.constant 0 : index
    %c0_4 = arith.constant 0 : index
    %2 = vector.load %arg3[%c0_3, %c0_4] : memref<4x32xf32, #tpu.memory_space<vmem>>, vector<4x32xf32>
    %3 = vector.extract_strided_slice %1 {offsets = [0, 0], sizes = [24, 32], strides = [1, 1]} : vector<120x32xbf16> to vector<24x32xbf16>
    %cst = arith.constant dense<0.000000e+00> : vector<128x32xf32>
    %4 = tpu.matmul %0, %3, %cst {dimension_numbers = #tpu.dot_dimension_numbers<[1], [0], [0], [1], [0, 0, 1, 1], [], []>} : vector<128x24xbf16>, vector<24x32xbf16>, vector<128x32xf32> -> vector<128x32xf32>
    %5 = vector.extract_strided_slice %2 {offsets = [0, 0], sizes = [1, 32], strides = [1, 1]} : vector<4x32xf32> to vector<1x32xf32>
    %6 = vector.broadcast %5 : vector<1x32xf32> to vector<128x32xf32>
    %7 = arith.addf %4, %6 : vector<128x32xf32>
    %cst_5 = arith.constant 0.000000e+00 : f32
    %8 = vector.broadcast %cst_5 : f32 to vector<128x32xf32>
    %9 = arith.cmpf ogt, %7, %8 : vector<128x32xf32>
    %cst_6 = arith.constant 2.000000e-01 : f32
    %10 = vector.broadcast %cst_6 : f32 to vector<128x32xf32>
    %11 = arith.mulf %10, %7 : vector<128x32xf32>
    %12 = arith.select %9, %7, %11 : vector<128x32xi1>, vector<128x32xf32>
    %13 = arith.truncf %12 : vector<128x32xf32> to vector<128x32xbf16>
    %14 = vector.extract_strided_slice %1 {offsets = [24, 0], sizes = [32, 32], strides = [1, 1]} : vector<120x32xbf16> to vector<32x32xbf16>
    %cst_7 = arith.constant dense<0.000000e+00> : vector<128x32xf32>
    %15 = tpu.matmul %13, %14, %cst_7 {dimension_numbers = #tpu.dot_dimension_numbers<[1], [0], [0], [1], [0, 0, 1, 1], [], []>} : vector<128x32xbf16>, vector<32x32xbf16>, vector<128x32xf32> -> vector<128x32xf32>
    %16 = vector.extract_strided_slice %2 {offsets = [1, 0], sizes = [1, 32], strides = [1, 1]} : vector<4x32xf32> to vector<1x32xf32>
    %17 = vector.broadcast %16 : vector<1x32xf32> to vector<128x32xf32>
    %18 = arith.addf %15, %17 : vector<128x32xf32>
    %cst_8 = arith.constant 0.000000e+00 : f32
    %19 = vector.broadcast %cst_8 : f32 to vector<128x32xf32>
    %20 = arith.cmpf ogt, %18, %19 : vector<128x32xf32>
    %cst_9 = arith.constant 2.000000e-01 : f32
    %21 = vector.broadcast %cst_9 : f32 to vector<128x32xf32>
    %22 = arith.mulf %21, %18 : vector<128x32xf32>
    %23 = arith.select %20, %18, %22 : vector<128x32xi1>, vector<128x32xf32>
    %24 = arith.truncf %23 : vector<128x32xf32> to vector<128x32xbf16>
    %25 = vector.extract_strided_slice %1 {offsets = [56, 0], sizes = [32, 32], strides = [1, 1]} : vector<120x32xbf16> to vector<32x32xbf16>
    %cst_10 = arith.constant dense<0.000000e+00> : vector<128x32xf32>
    %26 = tpu.matmul %24, %25, %cst_10 {dimension_numbers = #tpu.dot_dimension_numbers<[1], [0], [0], [1], [0, 0, 1, 1], [], []>} : vector<128x32xbf16>, vector<32x32xbf16>, vector<128x32xf32> -> vector<128x32xf32>
    %27 = vector.extract_strided_slice %2 {offsets = [2, 0], sizes = [1, 32], strides = [1, 1]} : vector<4x32xf32> to vector<1x32xf32>
    %28 = vector.broadcast %27 : vector<1x32xf32> to vector<128x32xf32>
    %29 = arith.addf %26, %28 : vector<128x32xf32>
    %cst_11 = arith.constant 0.000000e+00 : f32
    %30 = vector.broadcast %cst_11 : f32 to vector<128x32xf32>
    %31 = arith.cmpf ogt, %29, %30 : vector<128x32xf32>
    %cst_12 = arith.constant 2.000000e-01 : f32
    %32 = vector.broadcast %cst_12 : f32 to vector<128x32xf32>
    %33 = arith.mulf %32, %29 : vector<128x32xf32>
    %34 = arith.select %31, %29, %33 : vector<128x32xi1>, vector<128x32xf32>
    %35 = arith.truncf %34 : vector<128x32xf32> to vector<128x32xbf16>
    %36 = vector.extract_strided_slice %1 {offsets = [88, 0], sizes = [32, 32], strides = [1, 1]} : vector<120x32xbf16> to vector<32x32xbf16>
    %cst_13 = arith.constant dense<0.000000e+00> : vector<128x32xf32>
    %37 = tpu.matmul %35, %36, %cst_13 {dimension_numbers = #tpu.dot_dimension_numbers<[1], [0], [0], [1], [0, 0, 1, 1], [], []>} : vector<128x32xbf16>, vector<32x32xbf16>, vector<128x32xf32> -> vector<128x32xf32>
    %38 = vector.extract_strided_slice %2 {offsets = [3, 0], sizes = [1, 32], strides = [1, 1]} : vector<4x32xf32> to vector<1x32xf32>
    %39 = vector.broadcast %38 : vector<1x32xf32> to vector<128x32xf32>
    %40 = arith.addf %37, %39 : vector<128x32xf32>
    %41 = vector.extract_strided_slice %40 {offsets = [0, 0], sizes = [128, 4], strides = [1, 1]} : vector<128x32xf32> to vector<128x4xf32>
    %c0_14 = arith.constant 0 : index
    %c0_15 = arith.constant 0 : index
    %42 = vector.load %arg4[%c0_14, %c0_15] : memref<128x4xf32, #tpu.memory_space<vmem>>, vector<128x4xf32>
    tpu.vector_store %arg4[%c0_14, %c0_15], %41 {strides = array<i32>} : memref<128x4xf32, #tpu.memory_space<vmem>>, vector<128x4xf32>,
    return
  }
  func.func @transform_0(%arg0: i32) -> (i32, i32) {
    %c0_i32 = arith.constant 0 : i32
    %c0_i32_0 = arith.constant 0 : i32
    return %arg0, %c0_i32 : i32, i32
  }
  func.func @transform_1(%arg0: i32) -> (i32, i32) {
    %c0_i32 = arith.constant 0 : i32
    %c0_i32_0 = arith.constant 0 : i32
    %c0_i32_1 = arith.constant 0 : i32
    return %c0_i32, %c0_i32_0 : i32, i32
  }
  func.func @transform_2(%arg0: i32) -> (i32, i32) {
    %c0_i32 = arith.constant 0 : i32
    %c0_i32_0 = arith.constant 0 : i32
    %c0_i32_1 = arith.constant 0 : i32
    return %c0_i32, %c0_i32_0 : i32, i32
  }
  func.func @transform_3(%arg0: i32) -> (i32, i32) {
    %c0_i32 = arith.constant 0 : i32
    %c0_i32_0 = arith.constant 0 : i32
    return %arg0, %c0_i32 : i32, i32
  }
}

</mosaic_0001>

<bundles_post_ra>
// kernel: allconv_forward.2
= control target key start
LH: loop header
LB: loop body
LE: loop exit
PB: predicated region body
PF: predicated region fallthrough
CT: control target
= control target key end

     0   :  { %vm125_vm0 = vcmask 1043456   ;;  %vm100_vm1 = vcmask 195584   ;;  %v47_v15 = vlaneseq  ;;  %vm298_vm6 = vcmask 261120   ;;  %s1699_s1 = inlined_call_operand.vmem [shape: bf16[120,32], index: 1, kind: input, shape index: {}]   ;;  %s1700_s0 = inlined_call_operand.vmem [shape: bf16[128,24], index: 0, kind: input, shape index: {}]   ;;  %s1701_s2 = inlined_call_operand.vmem [shape: f32[4,32], index: 2, kind: input, shape index: {}]   ;;  %s1702_s3 = inlined_call_operand.vmem [shape: bf16[128,20], index: 3, kind: output, shape index: {}]  }
   0x1   :  { %v1303_v0 = vld [vmem:[%s1699_s1] sm:$0xff]   ;;  %v1304_v1 = vld [vmem:[%s1699_s1 + $0x8] ss:$0 sps:$4 sm:$0xff]   ;;  %v1307_v5 = vld [vmem:[%s1700_s0 + $0x10] sm:$0xff]  }
   0x2   :  { %1219 = vmatprep.subr.bf16.mxu0 %v1303_v0  ;;  %v1305_v2 = vld [vmem:[%s1700_s0] sm:$0xff]   ;;  %v127_v3 = vsel %vm125_vm0, %v1304_v1, 0  ;;  %v1306_v4 = vld [vmem:[%s1700_s0 + $0x8] sm:$0xff]   ;;  %v1308_v6 = vld [vmem:[%s1700_s0 + $0x18] sm:$0xff]   ;;  %v1454_v16 = vshrl.u32 %v47_v15, 7 }
   0x3   :  { %1220 = vmatpush3.bf16.msra.mxu0 %v1303_v0  ;;  %1223 = vmatprep.mubr.msk.bf16.mxu0 %vm100_vm1, %v1305_v2  ;;  %v1309_v7 = vld [vmem:[%s1700_s0 + $0x20] sm:$0xff]   ;;  %v1310_v8 = vld [vmem:[%s1700_s0 + $0x28] sm:$0xff]   ;;  %v1311_v9 = vld [vmem:[%s1700_s0 + $0x30] sm:$0xff]  }
   0x4   :  { %1299 = vmatprep.subr.msk.bf16.mxu0 %vm125_vm0, %v1304_v1  ;;  %v1312_v10 = vld [vmem:[%s1700_s0 + $0x38] sm:$0xff]   ;;  %v1313_v11 = vld [vmem:[%s1699_s1 + $0xc] sm:$0xff]   ;;  %v1316_v14 = vld [vmem:[%s1699_s1 + $0x24] sm:$0xff]   ;;  %v49_v17 = vsub.s32 0, %v1454_v16 }
   0x5   :  { %1239 = vmatprep.subr.bf16.mxu1 %v1313_v11  ;;  %v1314_v12 = vld [vmem:[%s1699_s1 + $0x14] sm:$0xff]   ;;  %v1315_v13 = vld [vmem:[%s1699_s1 + $0x1c] sm:$0xff]  }
   0x6   :  { %1240 = vmatpush3.bf16.msra.mxu1 %v1313_v11  ;;  %v1460_v18 = vld [vmem:[%s1701_s2] sm:$0xf] }
   0x7   :  { %1222 = vmatpush3.bf16.msra.mxu0 %v127_v3  ;;  %1241 = vmatprep.subr.bf16.mxu1 %v1314_v12  ;;  %v1463_v19 = vrot.slane %v1460_v18, %v49_v17 }
   0x8   :  { %1259 = vmatprep.subr.bf16.mxu0 %v1315_v13 }
   0xa   :  { %1224 = vmatmul.mubr.msk.bf16.vlgmr.msra.gmra.mrb[0].mxu0 %vm100_vm1, %v1306_v4  ;;  %1242 = vmatpush3.bf16.msra.mxu1 %v1314_v12 }
   0xb   :  { %1227 = vmatprep.mubr.msk.bf16.mxu0 %vm100_vm1, %v1307_v5  ;;  %1260 = vmatpush3.bf16.msra.mxu0 %v1315_v13 }
   0xc   :  { %1261 = vmatprep.subr.bf16.mxu0 %v1316_v14 }
   0xf   :  { %1262 = vmatpush3.bf16.msra.mxu0 %v1316_v14 }
  0x12   :  { %1228 = vmatmul.mubr.msk.bf16.gmra.mrb[4].mxu0 %vm100_vm1, %v1308_v6 }
  0x13   :  { %1231 = vmatprep.mubr.msk.bf16.mxu0 %vm100_vm1, %v1309_v7 }
  0x1a   :  { %1232 = vmatmul.mubr.msk.bf16.gmra.mrb[8].mxu0 %vm100_vm1, %v1310_v8 }
  0x1b   :  { %1235 = vmatprep.mubr.msk.bf16.mxu0 %vm100_vm1, %v1311_v9 }
  0x22   :  { %1236 = vmatmul.mubr.msk.bf16.gmra.mrb[12].mxu0 %vm100_vm1, %v1312_v10 }
  0xdd   :  { %v1225_v20 = vpop.f32.mrb[0].mxu0 }
  0xde   :  { %v172_v21 = vadd.f32 %v1225_v20, %v1463_v19  ;;  %v163_v22 = vpop.f32.mrb[1].mxu0 }
  0xdf   :  { %v164_v23 = vadd.f32 %v163_v22, %v1463_v19  ;;  %v1226_v24 = vpop.f32.mrb[2].mxu0 }
  0xe0   :  { %v244_v25 = vmul.f32 0.2, %v172_v21  ;;  %v175_v26 = vadd.f32 %v1226_v24, %v1463_v19  ;;  %v166_v27 = vpop.f32.mrb[3].mxu0  ;;  %vm228_vm2 = vcmp.gt.f32.partialorder %v172_v21, 0.0 }
  0xe1   :  { %v242_v28 = vmul.f32 0.2, %v164_v23  ;;  %v167_v29 = vadd.f32 %v166_v27, %v1463_v19  ;;  %vm226_vm4 = vcmp.gt.f32.partialorder %v164_v23, 0.0 }
  0xe2   :  { %vm229_vm3 = vcmp.gt.f32.partialorder %v175_v26, 0.0  ;;  %v245_v30 = vmul.f32 0.2, %v175_v26  ;;  %v260_v32 = vsel %vm228_vm2, %v172_v21, %v244_v25 }
  0xe3   :  { %v243_v31 = vmul.f32 0.2, %v167_v29  ;;  %vm227_vm5 = vcmp.gt.f32.partialorder %v167_v29, 0.0  ;;  %v258_v36 = vsel %vm226_vm4, %v164_v23, %v242_v28 }
  0xe4   :  { %v261_v33 = vsel %vm229_vm3, %v175_v26, %v245_v30 }
  0xe5   :  { %v275_v34 = vpack.c.bf16 %v261_v33, %v260_v32  ;;  %v1229_v35 = vpop.f32.mrb[4].mxu0  ;;  %v259_v37 = vsel %vm227_vm5, %v167_v29, %v243_v31  ;;  %v1318_v31 = vld [vmem:[%s1699_s1 + $0x34] sm:$0xff]   ;;  %v284_v32 = vsub.s32 1, %v1454_v16 }
  0xe6   :  { %v188_v38 = vadd.f32 %v1229_v35, %v1463_v19  ;;  %v179_v39 = vpop.f32.mrb[5].mxu0  ;;  %v274_v40 = vpack.c.bf16 %v259_v37, %v258_v36 }
  0xe7   :  { %v180_v41 = vadd.f32 %v179_v39, %v1463_v19  ;;  %v1230_v42 = vpop.f32.mrb[6].mxu0  ;;  %v1497_v33 = vrot.slane %v1460_v18, %v284_v32 }
  0xe8   :  { %v248_v43 = vmul.f32 0.2, %v188_v38  ;;  %v191_v44 = vadd.f32 %v1230_v42, %v1463_v19  ;;  %v182_v45 = vpop.f32.mrb[7].mxu0  ;;  %1243 = vmatprep.mubr.msk.bf16.mxu1 %vm298_vm6, %v274_v40  ;;  %vm232_vm7 = vcmp.gt.f32.partialorder %v188_v38, 0.0 }
  0xe9   :  { %v246_v46 = vmul.f32 0.2, %v180_v41  ;;  %v183_v47 = vadd.f32 %v182_v45, %v1463_v19  ;;  %1244 = vmatmul.mubr.msk.bf16.vlgmr.msra.gmra.mrb[0].mxu1 %vm298_vm6, %v275_v34  ;;  %vm230_vm8 = vcmp.gt.f32.partialorder %v180_v41, 0.0 }
  0xea   :  { %vm233_vm9 = vcmp.gt.f32.partialorder %v191_v44, 0.0  ;;  %v249_v48 = vmul.f32 0.2, %v191_v44  ;;  %v264_v50 = vsel %vm232_vm7, %v188_v38, %v248_v43 }
  0xeb   :  { %vm231_vm10 = vcmp.gt.f32.partialorder %v183_v47, 0.0  ;;  %v247_v49 = vmul.f32 0.2, %v183_v47  ;;  %v262_v52 = vsel %vm230_vm8, %v180_v41, %v246_v46 }
  0xec   :  { %v265_v51 = vsel %vm233_vm9, %v191_v44, %v249_v48 }
  0xed   :  { %v277_v53 = vpack.c.bf16 %v265_v51, %v264_v50  ;;  %v263_v54 = vsel %vm231_vm10, %v183_v47, %v247_v49  ;;  %v1233_v55 = vpop.f32.mrb[8].mxu0 }
  0xee   :  { %v276_v56 = vpack.c.bf16 %v263_v54, %v262_v52  ;;  %v204_v57 = vadd.f32 %v1233_v55, %v1463_v19  ;;  %v195_v58 = vpop.f32.mrb[9].mxu0 }
  0xef   :  { %v196_v59 = vadd.f32 %v195_v58, %v1463_v19  ;;  %v1234_v60 = vpop.f32.mrb[10].mxu0 }
  0xf0   :  { %v252_v61 = vmul.f32 0.2, %v204_v57  ;;  %v207_v62 = vadd.f32 %v1234_v60, %v1463_v19  ;;  %v198_v63 = vpop.f32.mrb[11].mxu0  ;;  %1247 = vmatprep.mubr.msk.bf16.mxu1 %vm298_vm6, %v276_v56  ;;  %vm236_vm11 = vcmp.gt.f32.partialorder %v204_v57, 0.0 }
  0xf1   :  { %v250_v0 = vmul.f32 0.2, %v196_v59  ;;  %v199_v1 = vadd.f32 %v198_v63, %v1463_v19  ;;  %1248 = vmatmul.mubr.msk.bf16.gmra.mrb[4].mxu1 %vm298_vm6, %v277_v53  ;;  %vm234_vm12 = vcmp.gt.f32.partialorder %v196_v59, 0.0 }
  0xf2   :  { %vm237_vm13 = vcmp.gt.f32.partialorder %v207_v62, 0.0  ;;  %v253_v2 = vmul.f32 0.2, %v207_v62  ;;  %v268_v4 = vsel %vm236_vm11, %v204_v57, %v252_v61 }
  0xf3   :  { %vm235_vm14 = vcmp.gt.f32.partialorder %v199_v1, 0.0  ;;  %v251_v3 = vmul.f32 0.2, %v199_v1  ;;  %v266_v6 = vsel %vm234_vm12, %v196_v59, %v250_v0 }
  0xf4   :  { %v269_v5 = vsel %vm237_vm13, %v207_v62, %v253_v2 }
  0xf5   :  { %v279_v7 = vpack.c.bf16 %v269_v5, %v268_v4  ;;  %v267_v8 = vsel %vm235_vm14, %v199_v1, %v251_v3  ;;  %v1237_v9 = vpop.f32.mrb[12].mxu0 }
  0xf6   :  { %v278_v10 = vpack.c.bf16 %v267_v8, %v266_v6  ;;  %v220_v11 = vadd.f32 %v1237_v9, %v1463_v19  ;;  %v211_v12 = vpop.f32.mrb[13].mxu0 }
  0xf7   :  { %v212_v13 = vadd.f32 %v211_v12, %v1463_v19  ;;  %v1238_v14 = vpop.f32.mrb[14].mxu0 }
  0xf8   :  { %v256_v15 = vmul.f32 0.2, %v220_v11  ;;  %v223_v17 = vadd.f32 %v1238_v14, %v1463_v19  ;;  %v214_v20 = vpop.f32.mrb[15].mxu0  ;;  %1251 = vmatprep.mubr.msk.bf16.mxu1 %vm298_vm6, %v278_v10  ;;  %vm240_vm15 = vcmp.gt.f32.partialorder %v220_v11, 0.0 }
  0xf9   :  { %v254_v21 = vmul.f32 0.2, %v212_v13  ;;  %v215_v22 = vadd.f32 %v214_v20, %v1463_v19  ;;  %1252 = vmatmul.mubr.msk.bf16.gmra.mrb[8].mxu1 %vm298_vm6, %v279_v7  ;;  %vm238_vm0 = vcmp.gt.f32.partialorder %v212_v13, 0.0  ;;  %v1317_v19 = vld [vmem:[%s1699_s1 + $0x2c] sm:$0xff]  }
  0xfa   :  { %vm241_vm1 = vcmp.gt.f32.partialorder %v223_v17, 0.0  ;;  %v257_v23 = vmul.f32 0.2, %v223_v17  ;;  %v272_v25 = vsel %vm240_vm15, %v220_v11, %v256_v15  ;;  %1279 = vmatprep.subr.bf16.mxu1 %v1317_v19 }
  0xfb   :  { %vm239_vm2 = vcmp.gt.f32.partialorder %v215_v22, 0.0  ;;  %v255_v24 = vmul.f32 0.2, %v215_v22  ;;  %v270_v27 = vsel %vm238_vm0, %v212_v13, %v254_v21  ;;  %1280 = vmatpush3.bf16.msra.mxu1 %v1317_v19 }
  0xfc   :  { %v273_v26 = vsel %vm241_vm1, %v223_v17, %v257_v23  ;;  %1281 = vmatprep.subr.bf16.mxu1 %v1318_v31 }
  0xfd   :  { %v281_v28 = vpack.c.bf16 %v273_v26, %v272_v25  ;;  %v271_v29 = vsel %vm239_vm2, %v215_v22, %v255_v24 }
  0xfe   :  { %v280_v30 = vpack.c.bf16 %v271_v29, %v270_v27 }
  0xff   :  { %1282 = vmatpush3.bf16.msra.mxu1 %v1318_v31 }
 0x100   :  { %1255 = vmatprep.mubr.msk.bf16.mxu1 %vm298_vm6, %v280_v30 }
 0x101   :  { %1256 = vmatmul.mubr.msk.bf16.gmra.mrb[12].mxu1 %vm298_vm6, %v281_v28 }
 0x1bc   :  { %v1245_v34 = vpop.f32.mrb[0].mxu1 }
 0x1bd   :  { %v366_v35 = vadd.f32 %v1245_v34, %v1497_v33  ;;  %v357_v36 = vpop.f32.mrb[1].mxu1 }
 0x1be   :  { %v358_v37 = vadd.f32 %v357_v36, %v1497_v33  ;;  %v1246_v38 = vpop.f32.mrb[2].mxu1 }
 0x1bf   :  { %v438_v39 = vmul.f32 0.2, %v366_v35  ;;  %v369_v40 = vadd.f32 %v1246_v38, %v1497_v33  ;;  %v360_v41 = vpop.f32.mrb[3].mxu1  ;;  %vm422_vm3 = vcmp.gt.f32.partialorder %v366_v35, 0.0 }
 0x1c0   :  { %v436_v42 = vmul.f32 0.2, %v358_v37  ;;  %v361_v43 = vadd.f32 %v360_v41, %v1497_v33  ;;  %vm420_vm4 = vcmp.gt.f32.partialorder %v358_v37, 0.0 }
 0x1c1   :  { %vm423_vm5 = vcmp.gt.f32.partialorder %v369_v40, 0.0  ;;  %v439_v44 = vmul.f32 0.2, %v369_v40  ;;  %v454_v46 = vsel %vm422_vm3, %v366_v35, %v438_v39 }
 0x1c2   :  { %vm421_vm7 = vcmp.gt.f32.partialorder %v361_v43, 0.0  ;;  %v437_v45 = vmul.f32 0.2, %v361_v43  ;;  %v452_v48 = vsel %vm420_vm4, %v358_v37, %v436_v42 }
 0x1c3   :  { %v455_v47 = vsel %vm423_vm5, %v369_v40, %v439_v44 }
 0x1c4   :  { %v469_v49 = vpack.c.bf16 %v455_v47, %v454_v46  ;;  %v453_v50 = vsel %vm421_vm7, %v361_v43, %v437_v45  ;;  %v1249_v51 = vpop.f32.mrb[4].mxu1  ;;  %v478_v45 = vsub.s32 2, %v1454_v16 }
 0x1c5   :  { %v468_v52 = vpack.c.bf16 %v453_v50, %v452_v48  ;;  %v382_v53 = vadd.f32 %v1249_v51, %v1497_v33  ;;  %v373_v54 = vpop.f32.mrb[5].mxu1 }
 0x1c6   :  { %v374_v55 = vadd.f32 %v373_v54, %v1497_v33  ;;  %v1250_v56 = vpop.f32.mrb[6].mxu1 }
 0x1c7   :  { %v442_v57 = vmul.f32 0.2, %v382_v53  ;;  %v385_v58 = vadd.f32 %v1250_v56, %v1497_v33  ;;  %v376_v59 = vpop.f32.mrb[7].mxu1  ;;  %1263 = vmatprep.mubr.msk.bf16.mxu0 %vm298_vm6, %v468_v52  ;;  %vm426_vm8 = vcmp.gt.f32.partialorder %v382_v53, 0.0 }
 0x1c8   :  { %v440_v60 = vmul.f32 0.2, %v374_v55  ;;  %v377_v61 = vadd.f32 %v376_v59, %v1497_v33  ;;  %1264 = vmatmul.mubr.msk.bf16.vlgmr.msra.gmra.mrb[16].mxu0 %vm298_vm6, %v469_v49  ;;  %vm424_vm9 = vcmp.gt.f32.partialorder %v374_v55, 0.0 }
 0x1c9   :  { %vm427_vm10 = vcmp.gt.f32.partialorder %v385_v58, 0.0  ;;  %v443_v62 = vmul.f32 0.2, %v385_v58  ;;  %v458_v0 = vsel %vm426_vm8, %v382_v53, %v442_v57 }
 0x1ca   :  { %vm425_vm11 = vcmp.gt.f32.partialorder %v377_v61, 0.0  ;;  %v441_v63 = vmul.f32 0.2, %v377_v61  ;;  %v456_v2 = vsel %vm424_vm9, %v374_v55, %v440_v60 }
 0x1cb   :  { %v459_v1 = vsel %vm427_vm10, %v385_v58, %v443_v62 }
 0x1cc   :  { %v471_v3 = vpack.c.bf16 %v459_v1, %v458_v0  ;;  %v457_v4 = vsel %vm425_vm11, %v377_v61, %v441_v63  ;;  %v1253_v5 = vpop.f32.mrb[8].mxu1 }
 0x1cd   :  { %v470_v6 = vpack.c.bf16 %v457_v4, %v456_v2  ;;  %v398_v7 = vadd.f32 %v1253_v5, %v1497_v33  ;;  %v389_v8 = vpop.f32.mrb[9].mxu1 }
 0x1ce   :  { %v390_v9 = vadd.f32 %v389_v8, %v1497_v33  ;;  %v1254_v10 = vpop.f32.mrb[10].mxu1 }
 0x1cf   :  { %v446_v11 = vmul.f32 0.2, %v398_v7  ;;  %v401_v12 = vadd.f32 %v1254_v10, %v1497_v33  ;;  %v392_v13 = vpop.f32.mrb[11].mxu1  ;;  %1267 = vmatprep.mubr.msk.bf16.mxu0 %vm298_vm6, %v470_v6  ;;  %vm430_vm12 = vcmp.gt.f32.partialorder %v398_v7, 0.0 }
 0x1d0   :  { %v444_v14 = vmul.f32 0.2, %v390_v9  ;;  %v393_v15 = vadd.f32 %v392_v13, %v1497_v33  ;;  %1268 = vmatmul.mubr.msk.bf16.gmra.mrb[20].mxu0 %vm298_vm6, %v471_v3  ;;  %vm428_vm13 = vcmp.gt.f32.partialorder %v390_v9, 0.0 }
 0x1d1   :  { %vm431_vm14 = vcmp.gt.f32.partialorder %v401_v12, 0.0  ;;  %v447_v17 = vmul.f32 0.2, %v401_v12  ;;  %v462_v21 = vsel %vm430_vm12, %v398_v7, %v446_v11 }
 0x1d2   :  { %vm429_vm15 = vcmp.gt.f32.partialorder %v393_v15, 0.0  ;;  %v445_v20 = vmul.f32 0.2, %v393_v15  ;;  %v460_v23 = vsel %vm428_vm13, %v390_v9, %v444_v14 }
 0x1d3   :  { %v463_v22 = vsel %vm431_vm14, %v401_v12, %v447_v17 }
 0x1d4   :  { %v473_v24 = vpack.c.bf16 %v463_v22, %v462_v21  ;;  %v461_v25 = vsel %vm429_vm15, %v393_v15, %v445_v20  ;;  %v1257_v26 = vpop.f32.mrb[12].mxu1 }
 0x1d5   :  { %v472_v27 = vpack.c.bf16 %v461_v25, %v460_v23  ;;  %v414_v28 = vadd.f32 %v1257_v26, %v1497_v33  ;;  %v405_v29 = vpop.f32.mrb[13].mxu1 }
 0x1d6   :  { %v406_v30 = vadd.f32 %v405_v29, %v1497_v33  ;;  %v1258_v19 = vpop.f32.mrb[14].mxu1 }
 0x1d7   :  { %v450_v31 = vmul.f32 0.2, %v414_v28  ;;  %v417_v32 = vadd.f32 %v1258_v19, %v1497_v33  ;;  %v408_v34 = vpop.f32.mrb[15].mxu1  ;;  %1271 = vmatprep.mubr.msk.bf16.mxu0 %vm298_vm6, %v472_v27  ;;  %vm434_vm0 = vcmp.gt.f32.partialorder %v414_v28, 0.0 }
 0x1d8   :  { %v448_v35 = vmul.f32 0.2, %v406_v30  ;;  %v409_v36 = vadd.f32 %v408_v34, %v1497_v33  ;;  %1272 = vmatmul.mubr.msk.bf16.gmra.mrb[24].mxu0 %vm298_vm6, %v473_v24  ;;  %vm432_vm1 = vcmp.gt.f32.partialorder %v406_v30, 0.0  ;;  %v1525_v33 = vrot.slane %v1460_v18, %v478_v45 }
 0x1d9   :  { %vm435_vm2 = vcmp.gt.f32.partialorder %v417_v32, 0.0  ;;  %v451_v37 = vmul.f32 0.2, %v417_v32  ;;  %v466_v39 = vsel %vm434_vm0, %v414_v28, %v450_v31 }
 0x1da   :  { %vm433_vm3 = vcmp.gt.f32.partialorder %v409_v36, 0.0  ;;  %v449_v38 = vmul.f32 0.2, %v409_v36  ;;  %v464_v41 = vsel %vm432_vm1, %v406_v30, %v448_v35 }
 0x1db   :  { %v467_v40 = vsel %vm435_vm2, %v417_v32, %v451_v37 }
 0x1dc   :  { %v475_v42 = vpack.c.bf16 %v467_v40, %v466_v39  ;;  %v465_v43 = vsel %vm433_vm3, %v409_v36, %v449_v38 }
 0x1dd   :  { %v474_v44 = vpack.c.bf16 %v465_v43, %v464_v41 }
 0x1df   :  { %1275 = vmatprep.mubr.msk.bf16.mxu0 %vm298_vm6, %v474_v44 }
 0x1e0   :  { %1276 = vmatmul.mubr.msk.bf16.gmra.mrb[28].mxu0 %vm298_vm6, %v475_v42 }
 0x29b   :  { %v1265_v46 = vpop.f32.mrb[16].mxu0 }
 0x29c   :  { %v559_v47 = vadd.f32 %v1265_v46, %v1525_v33  ;;  %v550_v48 = vpop.f32.mrb[17].mxu0 }
 0x29d   :  { %v551_v49 = vadd.f32 %v550_v48, %v1525_v33  ;;  %v1266_v50 = vpop.f32.mrb[18].mxu0 }
 0x29e   :  { %v631_v51 = vmul.f32 0.2, %v559_v47  ;;  %v562_v52 = vadd.f32 %v1266_v50, %v1525_v33  ;;  %v553_v53 = vpop.f32.mrb[19].mxu0  ;;  %vm615_vm4 = vcmp.gt.f32.partialorder %v559_v47, 0.0 }
 0x29f   :  { %v629_v54 = vmul.f32 0.2, %v551_v49  ;;  %v554_v55 = vadd.f32 %v553_v53, %v1525_v33  ;;  %vm613_vm5 = vcmp.gt.f32.partialorder %v551_v49, 0.0 }
 0x2a0   :  { %vm616_vm7 = vcmp.gt.f32.partialorder %v562_v52, 0.0  ;;  %v632_v56 = vmul.f32 0.2, %v562_v52  ;;  %v647_v58 = vsel %vm615_vm4, %v559_v47, %v631_v51 }
 0x2a1   :  { %vm614_vm8 = vcmp.gt.f32.partialorder %v554_v55, 0.0  ;;  %v630_v57 = vmul.f32 0.2, %v554_v55  ;;  %v645_v60 = vsel %vm613_vm5, %v551_v49, %v629_v54 }
 0x2a2   :  { %v648_v59 = vsel %vm616_vm7, %v562_v52, %v632_v56 }
 0x2a3   :  { %v662_v61 = vpack.c.bf16 %v648_v59, %v647_v58  ;;  %v646_v62 = vsel %vm614_vm8, %v554_v55, %v630_v57  ;;  %v1269_v63 = vpop.f32.mrb[20].mxu0  ;;  %v1383_v57 = vmov 20  }
 0x2a4   :  { %v661_v0 = vpack.c.bf16 %v646_v62, %v645_v60  ;;  %v575_v1 = vadd.f32 %v1269_v63, %v1525_v33  ;;  %v566_v2 = vpop.f32.mrb[21].mxu0  ;;  %1301 = vset.pattern.permute.xlu1 %v1383_v57  ;;  %1302 = vset.pattern.permute.xlu0 %v1383_v57 }
 0x2a5   :  { %v567_v3 = vadd.f32 %v566_v2, %v1525_v33  ;;  %v1270_v4 = vpop.f32.mrb[22].mxu0 }
 0x2a6   :  { %v635_v5 = vmul.f32 0.2, %v575_v1  ;;  %v578_v6 = vadd.f32 %v1270_v4, %v1525_v33  ;;  %v569_v7 = vpop.f32.mrb[23].mxu0  ;;  %1283 = vmatprep.mubr.msk.bf16.mxu1 %vm298_vm6, %v661_v0  ;;  %vm619_vm9 = vcmp.gt.f32.partialorder %v575_v1, 0.0 }
 0x2a7   :  { %v633_v8 = vmul.f32 0.2, %v567_v3  ;;  %v570_v9 = vadd.f32 %v569_v7, %v1525_v33  ;;  %1284 = vmatmul.mubr.msk.bf16.vlgmr.msra.gmra.mrb[16].mxu1 %vm298_vm6, %v662_v61  ;;  %vm617_vm10 = vcmp.gt.f32.partialorder %v567_v3, 0.0 }
 0x2a8   :  { %vm620_vm11 = vcmp.gt.f32.partialorder %v578_v6, 0.0  ;;  %v636_v10 = vmul.f32 0.2, %v578_v6  ;;  %v651_v12 = vsel %vm619_vm9, %v575_v1, %v635_v5 }
 0x2a9   :  { %vm618_vm12 = vcmp.gt.f32.partialorder %v570_v9, 0.0  ;;  %v634_v11 = vmul.f32 0.2, %v570_v9  ;;  %v649_v14 = vsel %vm617_vm10, %v567_v3, %v633_v8 }
 0x2aa   :  { %v652_v13 = vsel %vm620_vm11, %v578_v6, %v636_v10 }
 0x2ab   :  { %v664_v15 = vpack.c.bf16 %v652_v13, %v651_v12  ;;  %v650_v17 = vsel %vm618_vm12, %v570_v9, %v634_v11  ;;  %v1273_v20 = vpop.f32.mrb[24].mxu0 }
 0x2ac   :  { %v663_v21 = vpack.c.bf16 %v650_v17, %v649_v14  ;;  %v591_v22 = vadd.f32 %v1273_v20, %v1525_v33  ;;  %v582_v23 = vpop.f32.mrb[25].mxu0 }
 0x2ad   :  { %v583_v24 = vadd.f32 %v582_v23, %v1525_v33  ;;  %v1274_v25 = vpop.f32.mrb[26].mxu0 }
 0x2ae   :  { %v639_v26 = vmul.f32 0.2, %v591_v22  ;;  %v594_v27 = vadd.f32 %v1274_v25, %v1525_v33  ;;  %v585_v28 = vpop.f32.mrb[27].mxu0  ;;  %1287 = vmatprep.mubr.msk.bf16.mxu1 %vm298_vm6, %v663_v21  ;;  %vm623_vm13 = vcmp.gt.f32.partialorder %v591_v22, 0.0 }
 0x2af   :  { %v637_v29 = vmul.f32 0.2, %v583_v24  ;;  %v586_v30 = vadd.f32 %v585_v28, %v1525_v33  ;;  %1288 = vmatmul.mubr.msk.bf16.gmra.mrb[20].mxu1 %vm298_vm6, %v664_v15  ;;  %vm621_vm14 = vcmp.gt.f32.partialorder %v583_v24, 0.0 }
 0x2b0   :  { %vm624_vm15 = vcmp.gt.f32.partialorder %v594_v27, 0.0  ;;  %v640_v19 = vmul.f32 0.2, %v594_v27  ;;  %v655_v32 = vsel %vm623_vm13, %v591_v22, %v639_v26 }
 0x2b1   :  { %vm622_vm0 = vcmp.gt.f32.partialorder %v586_v30, 0.0  ;;  %v638_v31 = vmul.f32 0.2, %v586_v30  ;;  %v653_v35 = vsel %vm621_vm14, %v583_v24, %v637_v29 }
 0x2b2   :  { %v656_v34 = vsel %vm624_vm15, %v594_v27, %v640_v19 }
 0x2b3   :  { %v666_v36 = vpack.c.bf16 %v656_v34, %v655_v32  ;;  %v654_v37 = vsel %vm622_vm0, %v586_v30, %v638_v31  ;;  %v1277_v38 = vpop.f32.mrb[28].mxu0 }
 0x2b4   :  { %v665_v39 = vpack.c.bf16 %v654_v37, %v653_v35  ;;  %v607_v40 = vadd.f32 %v1277_v38, %v1525_v33  ;;  %v598_v41 = vpop.f32.mrb[29].mxu0 }
 0x2b5   :  { %v599_v42 = vadd.f32 %v598_v41, %v1525_v33  ;;  %v1278_v43 = vpop.f32.mrb[30].mxu0 }
 0x2b6   :  { %v643_v44 = vmul.f32 0.2, %v607_v40  ;;  %v610_v45 = vadd.f32 %v1278_v43, %v1525_v33  ;;  %v601_v46 = vpop.f32.mrb[31].mxu0  ;;  %1291 = vmatprep.mubr.msk.bf16.mxu1 %vm298_vm6, %v665_v39  ;;  %vm627_vm1 = vcmp.gt.f32.partialorder %v607_v40, 0.0 }
 0x2b7   :  { %v641_v47 = vmul.f32 0.2, %v599_v42  ;;  %v602_v48 = vadd.f32 %v601_v46, %v1525_v33  ;;  %1292 = vmatmul.mubr.msk.bf16.gmra.mrb[24].mxu1 %vm298_vm6, %v666_v36  ;;  %vm625_vm2 = vcmp.gt.f32.partialorder %v599_v42, 0.0  ;;  %v671_v33 = vsub.s32 3, %v1454_v16 }
 0x2b8   :  { %vm628_vm3 = vcmp.gt.f32.partialorder %v610_v45, 0.0  ;;  %v644_v49 = vmul.f32 0.2, %v610_v45  ;;  %v659_v51 = vsel %vm627_vm1, %v607_v40, %v643_v44 }
 0x2b9   :  { %vm626_vm4 = vcmp.gt.f32.partialorder %v602_v48, 0.0  ;;  %v642_v50 = vmul.f32 0.2, %v602_v48  ;;  %v657_v53 = vsel %vm625_vm2, %v599_v42, %v641_v47  ;;  %v1553_v58 = vrot.slane %v1460_v18, %v671_v33 }
 0x2ba   :  { %v660_v52 = vsel %vm628_vm3, %v610_v45, %v644_v49 }
 0x2bb   :  { %v668_v54 = vpack.c.bf16 %v660_v52, %v659_v51  ;;  %v658_v55 = vsel %vm626_vm4, %v602_v48, %v642_v50 }
 0x2bc   :  { %v667_v56 = vpack.c.bf16 %v658_v55, %v657_v53 }
 0x2be   :  { %1295 = vmatprep.mubr.msk.bf16.mxu1 %vm298_vm6, %v667_v56 }
 0x2bf   :  { %1296 = vmatmul.mubr.msk.bf16.gmra.mrb[28].mxu1 %vm298_vm6, %v668_v54  ;;  %vm1062_vm6 = vcmask 158720  }
 0x37a   :  { %v1285_v59 = vpop.f32.mrb[16].mxu1 }
 0x37b   :  { %v1556_v60 = vadd.f32 %v1285_v59, %v1553_v58  ;;  %v743_v61 = vpop.f32.mrb[17].mxu1 }
 0x37c   :  { %v1559_v62 = vadd.f32 %v743_v61, %v1553_v58  ;;  %v1286_v63 = vpop.f32.mrb[18].mxu1 }
 0x37d   :  { %v1133_v0 = vmul.f32 -1.442695, %v1556_v60  ;;  %v1563_v1 = vadd.f32 %v1286_v63, %v1553_v58  ;;  %v746_v2 = vpop.f32.mrb[19].mxu1 }
 0x37e   :  { %v1131_v16 = vmul.f32 -1.442695, %v1559_v62  ;;  %v1567_v18 = vadd.f32 %v746_v2, %v1553_v58 }
 0x37f   :  { %1319 = vpow2.f32 %v1133_v0  ;;  %v1134_v3 = vmul.f32 -1.442695, %v1563_v1 }
 0x380   :  { %1321 = vpow2.f32 %v1131_v16  ;;  %v1132_v4 = vmul.f32 -1.442695, %v1567_v18 }
 0x381   :  { %1323 = vpow2.f32 %v1134_v3 }
 0x382   :  { %1325 = vpow2.f32 %v1132_v4  ;;  %v1289_v5 = vpop.f32.mrb[20].mxu1 }
 0x383   :  { %v1572_v6 = vadd.f32 %v1289_v5, %v1553_v58  ;;  %v759_v7 = vpop.f32.mrb[21].mxu1 }
 0x384   :  { %v1575_v8 = vadd.f32 %v759_v7, %v1553_v58  ;;  %v1290_v9 = vpop.f32.mrb[22].mxu1 }
 0x385   :  { %v1137_v10 = vmul.f32 -1.442695, %v1572_v6  ;;  %v1579_v11 = vadd.f32 %v1290_v9, %v1553_v58  ;;  %v762_v12 = vpop.f32.mrb[23].mxu1 }
 0x386   :  { %v1135_v13 = vmul.f32 -1.442695, %v1575_v8  ;;  %v1583_v14 = vadd.f32 %v762_v12, %v1553_v58 }
 0x387   :  { %1327 = vpow2.f32 %v1137_v10  ;;  %v1138_v15 = vmul.f32 -1.442695, %v1579_v11 }
 0x388   :  { %1329 = vpow2.f32 %v1135_v13  ;;  %v1136_v17 = vmul.f32 -1.442695, %v1583_v14 }
 0x389   :  { %v1320_v20 = vpop.eup %1319  ;;  %1331 = vpow2.f32 %v1138_v15 }
 0x38a   :  { %v1322_v21 = vpop.eup %1321  ;;  %v856_v22 = vadd.f32 1.0, %v1320_v20  ;;  %1333 = vpow2.f32 %v1136_v17  ;;  %v1293_v23 = vpop.f32.mrb[24].mxu1 }
 0x38b   :  { %v1324_v24 = vpop.eup %1323  ;;  %v854_v25 = vadd.f32 1.0, %v1322_v21  ;;  %v1588_v26 = vadd.f32 %v1293_v23, %v1553_v58  ;;  %v775_v27 = vpop.f32.mrb[25].mxu1 }
 0x38c   :  { %v1326_v28 = vpop.eup %1325  ;;  %1335 = vrcp.f32 %v856_v22  ;;  %v857_v29 = vadd.f32 1.0, %v1324_v24  ;;  %v1591_v30 = vadd.f32 %v775_v27, %v1553_v58  ;;  %v1294_v19 = vpop.f32.mrb[26].mxu1 }
 0x38d   :  { %1337 = vrcp.f32 %v854_v25  ;;  %v855_v31 = vadd.f32 1.0, %v1326_v28  ;;  %v1141_v32 = vmul.f32 -1.442695, %v1588_v26  ;;  %v1595_v34 = vadd.f32 %v1294_v19, %v1553_v58  ;;  %v778_v35 = vpop.f32.mrb[27].mxu1 }
 0x38e   :  { %1339 = vrcp.f32 %v857_v29  ;;  %v1139_v36 = vmul.f32 -1.442695, %v1591_v30  ;;  %v1599_v37 = vadd.f32 %v778_v35, %v1553_v58 }
 0x38f   :  { %1341 = vrcp.f32 %v855_v31  ;;  %v1142_v38 = vmul.f32 -1.442695, %v1595_v34 }
 0x390   :  { %1343 = vpow2.f32 %v1141_v32  ;;  %v1140_v39 = vmul.f32 -1.442695, %v1599_v37 }
 0x391   :  { %v1328_v40 = vpop.eup %1327  ;;  %1345 = vpow2.f32 %v1139_v36 }
 0x392   :  { %v1330_v41 = vpop.eup %1329  ;;  %v860_v42 = vadd.f32 1.0, %v1328_v40  ;;  %1347 = vpow2.f32 %v1142_v38  ;;  %v1297_v43 = vpop.f32.mrb[28].mxu1 }
 0x393   :  { %v1332_v44 = vpop.eup %1331  ;;  %v858_v45 = vadd.f32 1.0, %v1330_v41  ;;  %1349 = vpow2.f32 %v1140_v39  ;;  %v1604_v46 = vadd.f32 %v1297_v43, %v1553_v58  ;;  %v791_v47 = vpop.f32.mrb[29].mxu1 }
 0x394   :  { %v1334_v48 = vpop.eup %1333  ;;  %1351 = vrcp.f32 %v860_v42  ;;  %v861_v49 = vadd.f32 1.0, %v1332_v44  ;;  %v1607_v50 = vadd.f32 %v791_v47, %v1553_v58  ;;  %v1298_v51 = vpop.f32.mrb[30].mxu1 }
 0x395   :  { %1353 = vrcp.f32 %v858_v45  ;;  %v859_v52 = vadd.f32 1.0, %v1334_v48  ;;  %v1145_v53 = vmul.f32 -1.442695, %v1604_v46  ;;  %v1611_v54 = vadd.f32 %v1298_v51, %v1553_v58  ;;  %v794_v55 = vpop.f32.mrb[31].mxu1 }
 0x396   :  { %v1336_v56 = vpop.eup %1335  ;;  %1355 = vrcp.f32 %v861_v49  ;;  %v1143_v57 = vmul.f32 -1.442695, %v1607_v50  ;;  %v1615_v33 = vadd.f32 %v794_v55, %v1553_v58 }
 0x397   :  { %v1338_v59 = vpop.eup %1337  ;;  %1357 = vrcp.f32 %v859_v52  ;;  %v1146_v61 = vmul.f32 -1.442695, %v1611_v54  ;;  %914 = vperm.xlu1 %1301, %v1336_v56  }
 0x398   :  { %v1340_v63 = vpop.eup %1339  ;;  %1359 = vpow2.f32 %v1145_v53  ;;  %v1144_v0 = vmul.f32 -1.442695, %v1615_v33  ;;  %904 = vperm.xlu0 %1302, %v1338_v59  }
 0x399   :  { %v1342_v2 = vpop.eup %1341  ;;  %1361 = vpow2.f32 %v1143_v57 }
 0x39a   :  { %v1344_v16 = vpop.eup %1343  ;;  %1363 = vpow2.f32 %v1146_v61 }
 0x39b   :  { %v1346_v3 = vpop.eup %1345  ;;  %v864_v4 = vadd.f32 1.0, %v1344_v16  ;;  %1365 = vpow2.f32 %v1144_v0  ;;  %919 = vperm.xlu1 %1301, %v1340_v63  }
 0x39c   :  { %v1348_v58 = vpop.eup %1347  ;;  %909 = vperm.xlu0 %1302, %v1342_v2   ;;  %v862_v7 = vadd.f32 1.0, %v1346_v3 }
 0x39d   :  { %v1350_v5 = vpop.eup %1349  ;;  %1367 = vrcp.f32 %v864_v4  ;;  %v865_v9 = vadd.f32 1.0, %v1348_v58 }
 0x39e   :  { %v1352_v10 = vpop.eup %1351  ;;  %v863_v13 = vadd.f32 1.0, %v1350_v5 }
 0x39f   :  { %v1354_v12 = vpop.eup %1353  ;;  %1369 = vrcp.f32 %v865_v9 }
 0x3a0   :  { %v1356_v15 = vpop.eup %1355  ;;  %934 = vperm.xlu0 %1302, %v1352_v10   ;;  %1371 = vrcp.f32 %v862_v7 }
 0x3a1   :  { %v1358_v17 = vpop.eup %1357  ;;  %939 = vperm.xlu1 %1301, %v1356_v15   ;;  %1373 = vrcp.f32 %v863_v13 }
 0x3a2   :  { %v1360_v20 = vpop.eup %1359 }
 0x3a3   :  { %v1362_v21 = vpop.eup %1361  ;;  %v868_v25 = vadd.f32 1.0, %v1360_v20 }
 0x3a4   :  { %v1364_v22 = vpop.eup %1363  ;;  %v866_v23 = vadd.f32 1.0, %v1362_v21  ;;  %924 = vperm.xlu0 %1302, %v1354_v12  }
 0x3a5   :  { %v1366_v24 = vpop.eup %1365  ;;  %929 = vperm.xlu1 %1301, %v1358_v17   ;;  %v869_v29 = vadd.f32 1.0, %v1364_v22 }
 0x3a6   :  { %1375 = vrcp.f32 %v866_v23  ;;  %v867_v27 = vadd.f32 1.0, %v1366_v24 }
 0x3a7   :  { %v1368_v28 = vpop.eup %1367 }
 0x3a8   :  { %1377 = vrcp.f32 %v867_v27  ;;  %954 = vperm.xlu0 %1302, %v1368_v28  }
 0x3a9   :  { %v1370_v19 = vpop.eup %1369  ;;  %1379 = vrcp.f32 %v868_v25 }
 0x3aa   :  { %959 = vperm.xlu1 %1301, %v1370_v19   ;;  %v1372_v31 = vpop.eup %1371  ;;  %1381 = vrcp.f32 %v869_v29 }
 0x3ab   :  { %v1374_v32 = vpop.eup %1373 }
 0x3ac   :  { %944 = vperm.xlu0 %1302, %v1372_v31  }
 0x3ae   :  { %949 = vperm.xlu1 %1301, %v1374_v32  }
 0x3b0   :  { %v1376_v35 = vpop.eup %1375 }
 0x3b1   :  { %964 = vperm.xlu0 %1302, %v1376_v35  }
 0x3b2   :  { %v1378_v36 = vpop.eup %1377 }
 0x3b3   :  { %969 = vperm.xlu1 %1301, %v1378_v36   ;;  %v1380_v38 = vpop.eup %1379 }
 0x3b4   :  { %v1382_v39 = vpop.eup %1381 }
 0x3b5   :  { %974 = vperm.xlu0 %1302, %v1380_v38  }
 0x3b7   :  { %979 = vperm.xlu1 %1301, %v1382_v39  }
 0x416   :  { %v915_v40 = vpop.permute.xlu1 %914 }
 0x417   :  { %v984_v41 = vmul.f32 %v915_v40, %v1556_v60  ;;  %v905_v42 = vpop.permute.xlu0 %904 }
 0x418   :  { %v982_v43 = vmul.f32 %v905_v42, %v1559_v62 }
 0x419   :  { %v1165_v44 = vpack.c.bf16 %v984_v41, %v984_v41 }
 0x41a   :  { %v1163_v45 = vpack.c.bf16 %v982_v43, %v982_v43  ;;  %v920_v47 = vpop.permute.xlu1 %919 }
 0x41b   :  { %1065 = vst.msk [vmem:[%s1702_s3 + $0x8] sm:$0xf] %vm1062_vm6, %v1165_v44  ;;  %v985_v48 = vmul.f32 %v920_v47, %v1563_v1  ;;  %v910_v49 = vpop.permute.xlu0 %909 }
 0x41c   :  { %1063 = vst.msk [vmem:[%s1702_s3] sm:$0xf] %vm1062_vm6, %v1163_v45  ;;  %v983_v60 = vmul.f32 %v910_v49, %v1567_v18 }
 0x41d   :  { %v1166_v51 = vpack.c.bf16 %v985_v48, %v985_v48 }
 0x41e   :  { %v1164_v62 = vpack.c.bf16 %v983_v60, %v983_v60 }
 0x41f   :  { %1066 = vst.msk [vmem:[%s1702_s3 + $0xc] sm:$0xf] %vm1062_vm6, %v1166_v51  ;;  %v935_v52 = vpop.permute.xlu0 %934 }
 0x420   :  { %1064 = vst.msk [vmem:[%s1702_s3 + $0x4] sm:$0xf] %vm1062_vm6, %v1164_v62  ;;  %v988_v1 = vmul.f32 %v935_v52, %v1572_v6  ;;  %v940_v53 = vpop.permute.xlu1 %939 }
 0x421   :  { %v989_v55 = vmul.f32 %v940_v53, %v1579_v11 }
 0x422   :  { %v1169_v56 = vpack.c.bf16 %v988_v1, %v988_v1 }
 0x423   :  { %v1170_v18 = vpack.c.bf16 %v989_v55, %v989_v55  ;;  %v925_v57 = vpop.permute.xlu0 %924 }
 0x424   :  { %1069 = vst.msk [vmem:[%s1702_s3 + $0x18] sm:$0xf] %vm1062_vm6, %v1169_v56  ;;  %v986_v59 = vmul.f32 %v925_v57, %v1575_v8  ;;  %v930_v61 = vpop.permute.xlu1 %929 }
 0x425   :  { %1070 = vst.msk [vmem:[%s1702_s3 + $0x1c] sm:$0xf] %vm1062_vm6, %v1170_v18  ;;  %v987_v6 = vmul.f32 %v930_v61, %v1583_v14 }
 0x426   :  { %v1167_v63 = vpack.c.bf16 %v986_v59, %v986_v59 }
 0x427   :  { %v1168_v11 = vpack.c.bf16 %v987_v6, %v987_v6  ;;  %v955_v0 = vpop.permute.xlu0 %954 }
 0x428   :  { %1067 = vst.msk [vmem:[%s1702_s3 + $0x10] sm:$0xf] %vm1062_vm6, %v1167_v63  ;;  %v992_v2 = vmul.f32 %v955_v0, %v1588_v26 }
 0x429   :  { %1068 = vst.msk [vmem:[%s1702_s3 + $0x14] sm:$0xf] %vm1062_vm6, %v1168_v11  ;;  %v960_v8 = vpop.permute.xlu1 %959 }
 0x42a   :  { %v1173_v16 = vpack.c.bf16 %v992_v2, %v992_v2  ;;  %v993_v3 = vmul.f32 %v960_v8, %v1595_v34 }
 0x42b   :  { %v945_v14 = vpop.permute.xlu0 %944 }
 0x42c   :  { %1073 = vst.msk [vmem:[%s1702_s3 + $0x28] sm:$0xf] %vm1062_vm6, %v1173_v16  ;;  %v1174_v4 = vpack.c.bf16 %v993_v3, %v993_v3  ;;  %v990_v58 = vmul.f32 %v945_v14, %v1591_v30 }
 0x42d   :  { %v950_v5 = vpop.permute.xlu1 %949 }
 0x42e   :  { %1074 = vst.msk [vmem:[%s1702_s3 + $0x2c] sm:$0xf] %vm1062_vm6, %v1174_v4  ;;  %v1171_v26 = vpack.c.bf16 %v990_v58, %v990_v58  ;;  %v991_v7 = vmul.f32 %v950_v5, %v1599_v37 }
 0x430   :  { %1071 = vst.msk [vmem:[%s1702_s3 + $0x20] sm:$0xf] %vm1062_vm6, %v1171_v26  ;;  %v1172_v34 = vpack.c.bf16 %v991_v7, %v991_v7  ;;  %v965_v9 = vpop.permute.xlu0 %964 }
 0x431   :  { %v994_v10 = vmul.f32 %v965_v9, %v1607_v50 }
 0x432   :  { %1072 = vst.msk [vmem:[%s1702_s3 + $0x24] sm:$0xf] %vm1062_vm6, %v1172_v34  ;;  %v970_v30 = vpop.permute.xlu1 %969 }
 0x433   :  { %v1175_v12 = vpack.c.bf16 %v994_v10, %v994_v10  ;;  %v995_v13 = vmul.f32 %v970_v30, %v1615_v33 }
 0x434   :  { %v975_v15 = vpop.permute.xlu0 %974 }
 0x435   :  { %1075 = vst.msk [vmem:[%s1702_s3 + $0x30] sm:$0xf] %vm1062_vm6, %v1175_v12  ;;  %v1176_v37 = vpack.c.bf16 %v995_v13, %v995_v13  ;;  %v996_v17 = vmul.f32 %v975_v15, %v1604_v46 }
 0x436   :  { %v980_v20 = vpop.permute.xlu1 %979 }
 0x437   :  { %1076 = vst.msk [vmem:[%s1702_s3 + $0x34] sm:$0xf] %vm1062_vm6, %v1176_v37  ;;  %v1177_v50 = vpack.c.bf16 %v996_v17, %v996_v17  ;;  %v997_v21 = vmul.f32 %v980_v20, %v1611_v54 }
 0x439   :  { %1077 = vst.msk [vmem:[%s1702_s3 + $0x38] sm:$0xf] %vm1062_vm6, %v1177_v50  ;;  %v1178_v33 = vpack.c.bf16 %v997_v21, %v997_v21 }
 0x43b   :  { %1078 = vst.msk [vmem:[%s1702_s3 + $0x3c] sm:$0xf] %vm1062_vm6, %v1178_v33 }

// kernel: allconv_forward.3
= control target key start
LH: loop header
LB: loop body
LE: loop exit
PB: predicated region body
PF: predicated region fallthrough
CT: control target
= control target key end

     0   :  { %vm125_vm0 = vcmask 1043456   ;;  %vm100_vm1 = vcmask 195584   ;;  %v47_v15 = vlaneseq  ;;  %vm298_vm6 = vcmask 261120   ;;  %s1245_s1 = inlined_call_operand.vmem [shape: bf16[120,32], index: 1, kind: input, shape index: {}]   ;;  %s1246_s0 = inlined_call_operand.vmem [shape: bf16[128,24], index: 0, kind: input, shape index: {}]   ;;  %s1247_s2 = inlined_call_operand.vmem [shape: f32[4,32], index: 2, kind: input, shape index: {}]   ;;  %s1248_s3 = inlined_call_operand.vmem [shape: f32[128,4], index: 3, kind: output, shape index: {}]  }
   0x1   :  { %v996_v0 = vld [vmem:[%s1245_s1] sm:$0xff]   ;;  %v997_v1 = vld [vmem:[%s1245_s1 + $0x8] ss:$0 sps:$4 sm:$0xff]   ;;  %v1000_v5 = vld [vmem:[%s1246_s0 + $0x10] sm:$0xff]  }
   0x2   :  { %915 = vmatprep.subr.bf16.mxu0 %v996_v0  ;;  %v998_v2 = vld [vmem:[%s1246_s0] sm:$0xff]   ;;  %v127_v3 = vsel %vm125_vm0, %v997_v1, 0  ;;  %v999_v4 = vld [vmem:[%s1246_s0 + $0x8] sm:$0xff]   ;;  %v1001_v6 = vld [vmem:[%s1246_s0 + $0x18] sm:$0xff]   ;;  %v1082_v16 = vshrl.u32 %v47_v15, 7 }
   0x3   :  { %916 = vmatpush3.bf16.msra.mxu0 %v996_v0  ;;  %919 = vmatprep.mubr.msk.bf16.mxu0 %vm100_vm1, %v998_v2  ;;  %v1002_v7 = vld [vmem:[%s1246_s0 + $0x20] sm:$0xff]   ;;  %v1003_v8 = vld [vmem:[%s1246_s0 + $0x28] sm:$0xff]   ;;  %v1004_v9 = vld [vmem:[%s1246_s0 + $0x30] sm:$0xff]  }
   0x4   :  { %995 = vmatprep.subr.msk.bf16.mxu0 %vm125_vm0, %v997_v1  ;;  %v1005_v10 = vld [vmem:[%s1246_s0 + $0x38] sm:$0xff]   ;;  %v1006_v11 = vld [vmem:[%s1245_s1 + $0xc] sm:$0xff]   ;;  %v1009_v14 = vld [vmem:[%s1245_s1 + $0x24] sm:$0xff]   ;;  %v49_v17 = vsub.s32 0, %v1082_v16 }
   0x5   :  { %935 = vmatprep.subr.bf16.mxu1 %v1006_v11  ;;  %v1007_v12 = vld [vmem:[%s1245_s1 + $0x14] sm:$0xff]   ;;  %v1008_v13 = vld [vmem:[%s1245_s1 + $0x1c] sm:$0xff]  }
   0x6   :  { %936 = vmatpush3.bf16.msra.mxu1 %v1006_v11  ;;  %v1088_v18 = vld [vmem:[%s1247_s2] sm:$0xf] }
   0x7   :  { %918 = vmatpush3.bf16.msra.mxu0 %v127_v3  ;;  %937 = vmatprep.subr.bf16.mxu1 %v1007_v12  ;;  %v1091_v19 = vrot.slane %v1088_v18, %v49_v17 }
   0x8   :  { %955 = vmatprep.subr.bf16.mxu0 %v1008_v13 }
   0xa   :  { %920 = vmatmul.mubr.msk.bf16.vlgmr.msra.gmra.mrb[0].mxu0 %vm100_vm1, %v999_v4  ;;  %938 = vmatpush3.bf16.msra.mxu1 %v1007_v12 }
   0xb   :  { %923 = vmatprep.mubr.msk.bf16.mxu0 %vm100_vm1, %v1000_v5  ;;  %956 = vmatpush3.bf16.msra.mxu0 %v1008_v13 }
   0xc   :  { %957 = vmatprep.subr.bf16.mxu0 %v1009_v14 }
   0xf   :  { %958 = vmatpush3.bf16.msra.mxu0 %v1009_v14 }
  0x12   :  { %924 = vmatmul.mubr.msk.bf16.gmra.mrb[4].mxu0 %vm100_vm1, %v1001_v6 }
  0x13   :  { %927 = vmatprep.mubr.msk.bf16.mxu0 %vm100_vm1, %v1002_v7 }
  0x1a   :  { %928 = vmatmul.mubr.msk.bf16.gmra.mrb[8].mxu0 %vm100_vm1, %v1003_v8 }
  0x1b   :  { %931 = vmatprep.mubr.msk.bf16.mxu0 %vm100_vm1, %v1004_v9 }
  0x22   :  { %932 = vmatmul.mubr.msk.bf16.gmra.mrb[12].mxu0 %vm100_vm1, %v1005_v10 }
  0xdd   :  { %v921_v20 = vpop.f32.mrb[0].mxu0 }
  0xde   :  { %v172_v21 = vadd.f32 %v921_v20, %v1091_v19  ;;  %v163_v22 = vpop.f32.mrb[1].mxu0 }
  0xdf   :  { %v164_v23 = vadd.f32 %v163_v22, %v1091_v19  ;;  %v922_v24 = vpop.f32.mrb[2].mxu0 }
  0xe0   :  { %v244_v25 = vmul.f32 0.2, %v172_v21  ;;  %v175_v26 = vadd.f32 %v922_v24, %v1091_v19  ;;  %v166_v27 = vpop.f32.mrb[3].mxu0  ;;  %vm228_vm2 = vcmp.gt.f32.partialorder %v172_v21, 0.0 }
  0xe1   :  { %v242_v28 = vmul.f32 0.2, %v164_v23  ;;  %v167_v29 = vadd.f32 %v166_v27, %v1091_v19  ;;  %vm226_vm4 = vcmp.gt.f32.partialorder %v164_v23, 0.0 }
  0xe2   :  { %vm229_vm3 = vcmp.gt.f32.partialorder %v175_v26, 0.0  ;;  %v245_v30 = vmul.f32 0.2, %v175_v26  ;;  %v260_v32 = vsel %vm228_vm2, %v172_v21, %v244_v25 }
  0xe3   :  { %v243_v31 = vmul.f32 0.2, %v167_v29  ;;  %vm227_vm5 = vcmp.gt.f32.partialorder %v167_v29, 0.0  ;;  %v258_v36 = vsel %vm226_vm4, %v164_v23, %v242_v28 }
  0xe4   :  { %v261_v33 = vsel %vm229_vm3, %v175_v26, %v245_v30 }
  0xe5   :  { %v275_v34 = vpack.c.bf16 %v261_v33, %v260_v32  ;;  %v925_v35 = vpop.f32.mrb[4].mxu0  ;;  %v259_v37 = vsel %vm227_vm5, %v167_v29, %v243_v31  ;;  %v1011_v31 = vld [vmem:[%s1245_s1 + $0x34] sm:$0xff]   ;;  %v284_v32 = vsub.s32 1, %v1082_v16 }
  0xe6   :  { %v188_v38 = vadd.f32 %v925_v35, %v1091_v19  ;;  %v179_v39 = vpop.f32.mrb[5].mxu0  ;;  %v274_v40 = vpack.c.bf16 %v259_v37, %v258_v36 }
  0xe7   :  { %v180_v41 = vadd.f32 %v179_v39, %v1091_v19  ;;  %v926_v42 = vpop.f32.mrb[6].mxu0  ;;  %v1125_v33 = vrot.slane %v1088_v18, %v284_v32 }
  0xe8   :  { %v248_v43 = vmul.f32 0.2, %v188_v38  ;;  %v191_v44 = vadd.f32 %v926_v42, %v1091_v19  ;;  %v182_v45 = vpop.f32.mrb[7].mxu0  ;;  %939 = vmatprep.mubr.msk.bf16.mxu1 %vm298_vm6, %v274_v40  ;;  %vm232_vm7 = vcmp.gt.f32.partialorder %v188_v38, 0.0 }
  0xe9   :  { %v246_v46 = vmul.f32 0.2, %v180_v41  ;;  %v183_v47 = vadd.f32 %v182_v45, %v1091_v19  ;;  %940 = vmatmul.mubr.msk.bf16.vlgmr.msra.gmra.mrb[0].mxu1 %vm298_vm6, %v275_v34  ;;  %vm230_vm8 = vcmp.gt.f32.partialorder %v180_v41, 0.0 }
  0xea   :  { %vm233_vm9 = vcmp.gt.f32.partialorder %v191_v44, 0.0  ;;  %v249_v48 = vmul.f32 0.2, %v191_v44  ;;  %v264_v50 = vsel %vm232_vm7, %v188_v38, %v248_v43 }
  0xeb   :  { %vm231_vm10 = vcmp.gt.f32.partialorder %v183_v47, 0.0  ;;  %v247_v49 = vmul.f32 0.2, %v183_v47  ;;  %v262_v52 = vsel %vm230_vm8, %v180_v41, %v246_v46 }
  0xec   :  { %v265_v51 = vsel %vm233_vm9, %v191_v44, %v249_v48 }
  0xed   :  { %v277_v53 = vpack.c.bf16 %v265_v51, %v264_v50  ;;  %v263_v54 = vsel %vm231_vm10, %v183_v47, %v247_v49  ;;  %v929_v55 = vpop.f32.mrb[8].mxu0 }
  0xee   :  { %v276_v56 = vpack.c.bf16 %v263_v54, %v262_v52  ;;  %v204_v57 = vadd.f32 %v929_v55, %v1091_v19  ;;  %v195_v58 = vpop.f32.mrb[9].mxu0 }
  0xef   :  { %v196_v59 = vadd.f32 %v195_v58, %v1091_v19  ;;  %v930_v60 = vpop.f32.mrb[10].mxu0 }
  0xf0   :  { %v252_v61 = vmul.f32 0.2, %v204_v57  ;;  %v207_v62 = vadd.f32 %v930_v60, %v1091_v19  ;;  %v198_v63 = vpop.f32.mrb[11].mxu0  ;;  %943 = vmatprep.mubr.msk.bf16.mxu1 %vm298_vm6, %v276_v56  ;;  %vm236_vm11 = vcmp.gt.f32.partialorder %v204_v57, 0.0 }
  0xf1   :  { %v250_v0 = vmul.f32 0.2, %v196_v59  ;;  %v199_v1 = vadd.f32 %v198_v63, %v1091_v19  ;;  %944 = vmatmul.mubr.msk.bf16.gmra.mrb[4].mxu1 %vm298_vm6, %v277_v53  ;;  %vm234_vm12 = vcmp.gt.f32.partialorder %v196_v59, 0.0 }
  0xf2   :  { %vm237_vm13 = vcmp.gt.f32.partialorder %v207_v62, 0.0  ;;  %v253_v2 = vmul.f32 0.2, %v207_v62  ;;  %v268_v4 = vsel %vm236_vm11, %v204_v57, %v252_v61 }
  0xf3   :  { %vm235_vm14 = vcmp.gt.f32.partialorder %v199_v1, 0.0  ;;  %v251_v3 = vmul.f32 0.2, %v199_v1  ;;  %v266_v6 = vsel %vm234_vm12, %v196_v59, %v250_v0 }
  0xf4   :  { %v269_v5 = vsel %vm237_vm13, %v207_v62, %v253_v2 }
  0xf5   :  { %v279_v7 = vpack.c.bf16 %v269_v5, %v268_v4  ;;  %v267_v8 = vsel %vm235_vm14, %v199_v1, %v251_v3  ;;  %v933_v9 = vpop.f32.mrb[12].mxu0 }
  0xf6   :  { %v278_v10 = vpack.c.bf16 %v267_v8, %v266_v6  ;;  %v220_v11 = vadd.f32 %v933_v9, %v1091_v19  ;;  %v211_v12 = vpop.f32.mrb[13].mxu0 }
  0xf7   :  { %v212_v13 = vadd.f32 %v211_v12, %v1091_v19  ;;  %v934_v14 = vpop.f32.mrb[14].mxu0 }
  0xf8   :  { %v256_v15 = vmul.f32 0.2, %v220_v11  ;;  %v223_v17 = vadd.f32 %v934_v14, %v1091_v19  ;;  %v214_v20 = vpop.f32.mrb[15].mxu0  ;;  %947 = vmatprep.mubr.msk.bf16.mxu1 %vm298_vm6, %v278_v10  ;;  %vm240_vm15 = vcmp.gt.f32.partialorder %v220_v11, 0.0 }
  0xf9   :  { %v254_v21 = vmul.f32 0.2, %v212_v13  ;;  %v215_v22 = vadd.f32 %v214_v20, %v1091_v19  ;;  %948 = vmatmul.mubr.msk.bf16.gmra.mrb[8].mxu1 %vm298_vm6, %v279_v7  ;;  %vm238_vm0 = vcmp.gt.f32.partialorder %v212_v13, 0.0  ;;  %v1010_v19 = vld [vmem:[%s1245_s1 + $0x2c] sm:$0xff]  }
  0xfa   :  { %vm241_vm1 = vcmp.gt.f32.partialorder %v223_v17, 0.0  ;;  %v257_v23 = vmul.f32 0.2, %v223_v17  ;;  %v272_v25 = vsel %vm240_vm15, %v220_v11, %v256_v15  ;;  %975 = vmatprep.subr.bf16.mxu1 %v1010_v19 }
  0xfb   :  { %vm239_vm2 = vcmp.gt.f32.partialorder %v215_v22, 0.0  ;;  %v255_v24 = vmul.f32 0.2, %v215_v22  ;;  %v270_v27 = vsel %vm238_vm0, %v212_v13, %v254_v21  ;;  %976 = vmatpush3.bf16.msra.mxu1 %v1010_v19 }
  0xfc   :  { %v273_v26 = vsel %vm241_vm1, %v223_v17, %v257_v23  ;;  %977 = vmatprep.subr.bf16.mxu1 %v1011_v31 }
  0xfd   :  { %v281_v28 = vpack.c.bf16 %v273_v26, %v272_v25  ;;  %v271_v29 = vsel %vm239_vm2, %v215_v22, %v255_v24 }
  0xfe   :  { %v280_v30 = vpack.c.bf16 %v271_v29, %v270_v27 }
  0xff   :  { %978 = vmatpush3.bf16.msra.mxu1 %v1011_v31 }
 0x100   :  { %951 = vmatprep.mubr.msk.bf16.mxu1 %vm298_vm6, %v280_v30 }
 0x101   :  { %952 = vmatmul.mubr.msk.bf16.gmra.mrb[12].mxu1 %vm298_vm6, %v281_v28 }
 0x1bc   :  { %v941_v34 = vpop.f32.mrb[0].mxu1 }
 0x1bd   :  { %v366_v35 = vadd.f32 %v941_v34, %v1125_v33  ;;  %v357_v36 = vpop.f32.mrb[1].mxu1 }
 0x1be   :  { %v358_v37 = vadd.f32 %v357_v36, %v1125_v33  ;;  %v942_v38 = vpop.f32.mrb[2].mxu1 }
 0x1bf   :  { %v438_v39 = vmul.f32 0.2, %v366_v35  ;;  %v369_v40 = vadd.f32 %v942_v38, %v1125_v33  ;;  %v360_v41 = vpop.f32.mrb[3].mxu1  ;;  %vm422_vm3 = vcmp.gt.f32.partialorder %v366_v35, 0.0 }
 0x1c0   :  { %v436_v42 = vmul.f32 0.2, %v358_v37  ;;  %v361_v43 = vadd.f32 %v360_v41, %v1125_v33  ;;  %vm420_vm4 = vcmp.gt.f32.partialorder %v358_v37, 0.0 }
 0x1c1   :  { %vm423_vm5 = vcmp.gt.f32.partialorder %v369_v40, 0.0  ;;  %v439_v44 = vmul.f32 0.2, %v369_v40  ;;  %v454_v46 = vsel %vm422_vm3, %v366_v35, %v438_v39 }
 0x1c2   :  { %vm421_vm7 = vcmp.gt.f32.partialorder %v361_v43, 0.0  ;;  %v437_v45 = vmul.f32 0.2, %v361_v43  ;;  %v452_v48 = vsel %vm420_vm4, %v358_v37, %v436_v42 }
 0x1c3   :  { %v455_v47 = vsel %vm423_vm5, %v369_v40, %v439_v44 }
 0x1c4   :  { %v469_v49 = vpack.c.bf16 %v455_v47, %v454_v46  ;;  %v453_v50 = vsel %vm421_vm7, %v361_v43, %v437_v45  ;;  %v945_v51 = vpop.f32.mrb[4].mxu1  ;;  %v478_v45 = vsub.s32 2, %v1082_v16 }
 0x1c5   :  { %v468_v52 = vpack.c.bf16 %v453_v50, %v452_v48  ;;  %v382_v53 = vadd.f32 %v945_v51, %v1125_v33  ;;  %v373_v54 = vpop.f32.mrb[5].mxu1 }
 0x1c6   :  { %v374_v55 = vadd.f32 %v373_v54, %v1125_v33  ;;  %v946_v56 = vpop.f32.mrb[6].mxu1 }
 0x1c7   :  { %v442_v57 = vmul.f32 0.2, %v382_v53  ;;  %v385_v58 = vadd.f32 %v946_v56, %v1125_v33  ;;  %v376_v59 = vpop.f32.mrb[7].mxu1  ;;  %959 = vmatprep.mubr.msk.bf16.mxu0 %vm298_vm6, %v468_v52  ;;  %vm426_vm8 = vcmp.gt.f32.partialorder %v382_v53, 0.0 }
 0x1c8   :  { %v440_v60 = vmul.f32 0.2, %v374_v55  ;;  %v377_v61 = vadd.f32 %v376_v59, %v1125_v33  ;;  %960 = vmatmul.mubr.msk.bf16.vlgmr.msra.gmra.mrb[16].mxu0 %vm298_vm6, %v469_v49  ;;  %vm424_vm9 = vcmp.gt.f32.partialorder %v374_v55, 0.0 }
 0x1c9   :  { %vm427_vm10 = vcmp.gt.f32.partialorder %v385_v58, 0.0  ;;  %v443_v62 = vmul.f32 0.2, %v385_v58  ;;  %v458_v0 = vsel %vm426_vm8, %v382_v53, %v442_v57 }
 0x1ca   :  { %vm425_vm11 = vcmp.gt.f32.partialorder %v377_v61, 0.0  ;;  %v441_v63 = vmul.f32 0.2, %v377_v61  ;;  %v456_v2 = vsel %vm424_vm9, %v374_v55, %v440_v60 }
 0x1cb   :  { %v459_v1 = vsel %vm427_vm10, %v385_v58, %v443_v62 }
 0x1cc   :  { %v471_v3 = vpack.c.bf16 %v459_v1, %v458_v0  ;;  %v457_v4 = vsel %vm425_vm11, %v377_v61, %v441_v63  ;;  %v949_v5 = vpop.f32.mrb[8].mxu1 }
 0x1cd   :  { %v470_v6 = vpack.c.bf16 %v457_v4, %v456_v2  ;;  %v398_v7 = vadd.f32 %v949_v5, %v1125_v33  ;;  %v389_v8 = vpop.f32.mrb[9].mxu1 }
 0x1ce   :  { %v390_v9 = vadd.f32 %v389_v8, %v1125_v33  ;;  %v950_v10 = vpop.f32.mrb[10].mxu1 }
 0x1cf   :  { %v446_v11 = vmul.f32 0.2, %v398_v7  ;;  %v401_v12 = vadd.f32 %v950_v10, %v1125_v33  ;;  %v392_v13 = vpop.f32.mrb[11].mxu1  ;;  %963 = vmatprep.mubr.msk.bf16.mxu0 %vm298_vm6, %v470_v6  ;;  %vm430_vm12 = vcmp.gt.f32.partialorder %v398_v7, 0.0 }
 0x1d0   :  { %v444_v14 = vmul.f32 0.2, %v390_v9  ;;  %v393_v15 = vadd.f32 %v392_v13, %v1125_v33  ;;  %964 = vmatmul.mubr.msk.bf16.gmra.mrb[20].mxu0 %vm298_vm6, %v471_v3  ;;  %vm428_vm13 = vcmp.gt.f32.partialorder %v390_v9, 0.0 }
 0x1d1   :  { %vm431_vm14 = vcmp.gt.f32.partialorder %v401_v12, 0.0  ;;  %v447_v17 = vmul.f32 0.2, %v401_v12  ;;  %v462_v21 = vsel %vm430_vm12, %v398_v7, %v446_v11 }
 0x1d2   :  { %vm429_vm15 = vcmp.gt.f32.partialorder %v393_v15, 0.0  ;;  %v445_v20 = vmul.f32 0.2, %v393_v15  ;;  %v460_v23 = vsel %vm428_vm13, %v390_v9, %v444_v14 }
 0x1d3   :  { %v463_v22 = vsel %vm431_vm14, %v401_v12, %v447_v17 }
 0x1d4   :  { %v473_v24 = vpack.c.bf16 %v463_v22, %v462_v21  ;;  %v461_v25 = vsel %vm429_vm15, %v393_v15, %v445_v20  ;;  %v953_v26 = vpop.f32.mrb[12].mxu1 }
 0x1d5   :  { %v472_v27 = vpack.c.bf16 %v461_v25, %v460_v23  ;;  %v414_v28 = vadd.f32 %v953_v26, %v1125_v33  ;;  %v405_v29 = vpop.f32.mrb[13].mxu1 }
 0x1d6   :  { %v406_v30 = vadd.f32 %v405_v29, %v1125_v33  ;;  %v954_v19 = vpop.f32.mrb[14].mxu1 }
 0x1d7   :  { %v450_v31 = vmul.f32 0.2, %v414_v28  ;;  %v417_v32 = vadd.f32 %v954_v19, %v1125_v33  ;;  %v408_v34 = vpop.f32.mrb[15].mxu1  ;;  %967 = vmatprep.mubr.msk.bf16.mxu0 %vm298_vm6, %v472_v27  ;;  %vm434_vm0 = vcmp.gt.f32.partialorder %v414_v28, 0.0 }
 0x1d8   :  { %v448_v35 = vmul.f32 0.2, %v406_v30  ;;  %v409_v36 = vadd.f32 %v408_v34, %v1125_v33  ;;  %968 = vmatmul.mubr.msk.bf16.gmra.mrb[24].mxu0 %vm298_vm6, %v473_v24  ;;  %vm432_vm1 = vcmp.gt.f32.partialorder %v406_v30, 0.0  ;;  %v1153_v33 = vrot.slane %v1088_v18, %v478_v45 }
 0x1d9   :  { %vm435_vm2 = vcmp.gt.f32.partialorder %v417_v32, 0.0  ;;  %v451_v37 = vmul.f32 0.2, %v417_v32  ;;  %v466_v39 = vsel %vm434_vm0, %v414_v28, %v450_v31 }
 0x1da   :  { %vm433_vm3 = vcmp.gt.f32.partialorder %v409_v36, 0.0  ;;  %v449_v38 = vmul.f32 0.2, %v409_v36  ;;  %v464_v41 = vsel %vm432_vm1, %v406_v30, %v448_v35 }
 0x1db   :  { %v467_v40 = vsel %vm435_vm2, %v417_v32, %v451_v37 }
 0x1dc   :  { %v475_v42 = vpack.c.bf16 %v467_v40, %v466_v39  ;;  %v465_v43 = vsel %vm433_vm3, %v409_v36, %v449_v38 }
 0x1dd   :  { %v474_v44 = vpack.c.bf16 %v465_v43, %v464_v41 }
 0x1df   :  { %971 = vmatprep.mubr.msk.bf16.mxu0 %vm298_vm6, %v474_v44 }
 0x1e0   :  { %972 = vmatmul.mubr.msk.bf16.gmra.mrb[28].mxu0 %vm298_vm6, %v475_v42 }
 0x29b   :  { %v961_v46 = vpop.f32.mrb[16].mxu0 }
 0x29c   :  { %v559_v47 = vadd.f32 %v961_v46, %v1153_v33  ;;  %v550_v48 = vpop.f32.mrb[17].mxu0 }
 0x29d   :  { %v551_v49 = vadd.f32 %v550_v48, %v1153_v33  ;;  %v962_v50 = vpop.f32.mrb[18].mxu0 }
 0x29e   :  { %v631_v51 = vmul.f32 0.2, %v559_v47  ;;  %v562_v52 = vadd.f32 %v962_v50, %v1153_v33  ;;  %v553_v53 = vpop.f32.mrb[19].mxu0  ;;  %vm615_vm4 = vcmp.gt.f32.partialorder %v559_v47, 0.0 }
 0x29f   :  { %v629_v54 = vmul.f32 0.2, %v551_v49  ;;  %v554_v55 = vadd.f32 %v553_v53, %v1153_v33  ;;  %vm613_vm5 = vcmp.gt.f32.partialorder %v551_v49, 0.0 }
 0x2a0   :  { %vm616_vm7 = vcmp.gt.f32.partialorder %v562_v52, 0.0  ;;  %v632_v56 = vmul.f32 0.2, %v562_v52  ;;  %v647_v58 = vsel %vm615_vm4, %v559_v47, %v631_v51 }
 0x2a1   :  { %vm614_vm8 = vcmp.gt.f32.partialorder %v554_v55, 0.0  ;;  %v630_v57 = vmul.f32 0.2, %v554_v55  ;;  %v645_v60 = vsel %vm613_vm5, %v551_v49, %v629_v54  ;;  %vm806_vm5 = vcmask 31744  }
 0x2a2   :  { %v648_v59 = vsel %vm616_vm7, %v562_v52, %v632_v56 }
 0x2a3   :  { %v662_v61 = vpack.c.bf16 %v648_v59, %v647_v58  ;;  %v646_v62 = vsel %vm614_vm8, %v554_v55, %v630_v57  ;;  %v965_v63 = vpop.f32.mrb[20].mxu0  ;;  %v671_v57 = vsub.s32 3, %v1082_v16 }
 0x2a4   :  { %v661_v0 = vpack.c.bf16 %v646_v62, %v645_v60  ;;  %v575_v1 = vadd.f32 %v965_v63, %v1153_v33  ;;  %v566_v2 = vpop.f32.mrb[21].mxu0 }
 0x2a5   :  { %v567_v3 = vadd.f32 %v566_v2, %v1153_v33  ;;  %v966_v4 = vpop.f32.mrb[22].mxu0 }
 0x2a6   :  { %v635_v5 = vmul.f32 0.2, %v575_v1  ;;  %v578_v6 = vadd.f32 %v966_v4, %v1153_v33  ;;  %v569_v7 = vpop.f32.mrb[23].mxu0  ;;  %979 = vmatprep.mubr.msk.bf16.mxu1 %vm298_vm6, %v661_v0  ;;  %vm619_vm9 = vcmp.gt.f32.partialorder %v575_v1, 0.0 }
 0x2a7   :  { %v633_v8 = vmul.f32 0.2, %v567_v3  ;;  %v570_v9 = vadd.f32 %v569_v7, %v1153_v33  ;;  %980 = vmatmul.mubr.msk.bf16.vlgmr.msra.gmra.mrb[16].mxu1 %vm298_vm6, %v662_v61  ;;  %vm617_vm10 = vcmp.gt.f32.partialorder %v567_v3, 0.0 }
 0x2a8   :  { %vm620_vm11 = vcmp.gt.f32.partialorder %v578_v6, 0.0  ;;  %v636_v10 = vmul.f32 0.2, %v578_v6  ;;  %v651_v12 = vsel %vm619_vm9, %v575_v1, %v635_v5 }
 0x2a9   :  { %vm618_vm12 = vcmp.gt.f32.partialorder %v570_v9, 0.0  ;;  %v634_v11 = vmul.f32 0.2, %v570_v9  ;;  %v649_v14 = vsel %vm617_vm10, %v567_v3, %v633_v8 }
 0x2aa   :  { %v652_v13 = vsel %vm620_vm11, %v578_v6, %v636_v10 }
 0x2ab   :  { %v664_v15 = vpack.c.bf16 %v652_v13, %v651_v12  ;;  %v650_v17 = vsel %vm618_vm12, %v570_v9, %v634_v11  ;;  %v969_v20 = vpop.f32.mrb[24].mxu0 }
 0x2ac   :  { %v663_v21 = vpack.c.bf16 %v650_v17, %v649_v14  ;;  %v591_v22 = vadd.f32 %v969_v20, %v1153_v33  ;;  %v582_v23 = vpop.f32.mrb[25].mxu0 }
 0x2ad   :  { %v583_v24 = vadd.f32 %v582_v23, %v1153_v33  ;;  %v970_v25 = vpop.f32.mrb[26].mxu0 }
 0x2ae   :  { %v639_v26 = vmul.f32 0.2, %v591_v22  ;;  %v594_v27 = vadd.f32 %v970_v25, %v1153_v33  ;;  %v585_v28 = vpop.f32.mrb[27].mxu0  ;;  %983 = vmatprep.mubr.msk.bf16.mxu1 %vm298_vm6, %v663_v21  ;;  %vm623_vm13 = vcmp.gt.f32.partialorder %v591_v22, 0.0 }
 0x2af   :  { %v637_v29 = vmul.f32 0.2, %v583_v24  ;;  %v586_v30 = vadd.f32 %v585_v28, %v1153_v33  ;;  %984 = vmatmul.mubr.msk.bf16.gmra.mrb[20].mxu1 %vm298_vm6, %v664_v15  ;;  %vm621_vm14 = vcmp.gt.f32.partialorder %v583_v24, 0.0 }
 0x2b0   :  { %vm624_vm15 = vcmp.gt.f32.partialorder %v594_v27, 0.0  ;;  %v640_v19 = vmul.f32 0.2, %v594_v27  ;;  %v655_v32 = vsel %vm623_vm13, %v591_v22, %v639_v26 }
 0x2b1   :  { %vm622_vm0 = vcmp.gt.f32.partialorder %v586_v30, 0.0  ;;  %v638_v31 = vmul.f32 0.2, %v586_v30  ;;  %v653_v35 = vsel %vm621_vm14, %v583_v24, %v637_v29 }
 0x2b2   :  { %v656_v34 = vsel %vm624_vm15, %v594_v27, %v640_v19 }
 0x2b3   :  { %v666_v36 = vpack.c.bf16 %v656_v34, %v655_v32  ;;  %v654_v37 = vsel %vm622_vm0, %v586_v30, %v638_v31  ;;  %v973_v38 = vpop.f32.mrb[28].mxu0 }
 0x2b4   :  { %v665_v39 = vpack.c.bf16 %v654_v37, %v653_v35  ;;  %v607_v40 = vadd.f32 %v973_v38, %v1153_v33  ;;  %v598_v41 = vpop.f32.mrb[29].mxu0 }
 0x2b5   :  { %v599_v42 = vadd.f32 %v598_v41, %v1153_v33  ;;  %v974_v43 = vpop.f32.mrb[30].mxu0 }
 0x2b6   :  { %v643_v44 = vmul.f32 0.2, %v607_v40  ;;  %v610_v45 = vadd.f32 %v974_v43, %v1153_v33  ;;  %v601_v46 = vpop.f32.mrb[31].mxu0  ;;  %987 = vmatprep.mubr.msk.bf16.mxu1 %vm298_vm6, %v665_v39  ;;  %vm627_vm1 = vcmp.gt.f32.partialorder %v607_v40, 0.0 }
 0x2b7   :  { %v641_v47 = vmul.f32 0.2, %v599_v42  ;;  %v602_v48 = vadd.f32 %v601_v46, %v1153_v33  ;;  %988 = vmatmul.mubr.msk.bf16.gmra.mrb[24].mxu1 %vm298_vm6, %v666_v36  ;;  %vm625_vm2 = vcmp.gt.f32.partialorder %v599_v42, 0.0  ;;  %v672_v33 = vrot.slane %v1088_v18, %v671_v57 }
 0x2b8   :  { %vm628_vm3 = vcmp.gt.f32.partialorder %v610_v45, 0.0  ;;  %v644_v49 = vmul.f32 0.2, %v610_v45  ;;  %v659_v51 = vsel %vm627_vm1, %v607_v40, %v643_v44 }
 0x2b9   :  { %vm626_vm4 = vcmp.gt.f32.partialorder %v602_v48, 0.0  ;;  %v642_v50 = vmul.f32 0.2, %v602_v48  ;;  %v657_v53 = vsel %vm625_vm2, %v599_v42, %v641_v47 }
 0x2ba   :  { %v660_v52 = vsel %vm628_vm3, %v610_v45, %v644_v49 }
 0x2bb   :  { %v668_v54 = vpack.c.bf16 %v660_v52, %v659_v51  ;;  %v658_v55 = vsel %vm626_vm4, %v602_v48, %v642_v50 }
 0x2bc   :  { %v667_v56 = vpack.c.bf16 %v658_v55, %v657_v53 }
 0x2be   :  { %991 = vmatprep.mubr.msk.bf16.mxu1 %vm298_vm6, %v667_v56 }
 0x2bf   :  { %992 = vmatmul.mubr.msk.bf16.gmra.mrb[28].mxu1 %vm298_vm6, %v668_v54 }
 0x37a   :  { %v981_v58 = vpop.f32.mrb[16].mxu1 }
 0x37b   :  { %v752_v59 = vadd.f32 %v981_v58, %v672_v33  ;;  %v743_v60 = vpop.f32.mrb[17].mxu1 }
 0x37c   :  { %v744_v61 = vadd.f32 %v743_v60, %v672_v33  ;;  %v982_v62 = vpop.f32.mrb[18].mxu1 }
 0x37d   :  { %809 = vst.msk [vmem:[%s1248_s3 + $0x10] sm:$0xff] %vm806_vm5, %v752_v59  ;;  %v755_v63 = vadd.f32 %v982_v62, %v672_v33  ;;  %v746_v0 = vpop.f32.mrb[19].mxu1 }
 0x37e   :  { %807 = vst.msk [vmem:[%s1248_s3] sm:$0xff] %vm806_vm5, %v744_v61  ;;  %v747_v16 = vadd.f32 %v746_v0, %v672_v33 }
 0x37f   :  { %810 = vst.msk [vmem:[%s1248_s3 + $0x18] sm:$0xff] %vm806_vm5, %v755_v63 }
 0x380   :  { %808 = vst.msk [vmem:[%s1248_s3 + $0x8] sm:$0xff] %vm806_vm5, %v747_v16 }
 0x382   :  { %v985_v18 = vpop.f32.mrb[20].mxu1 }
 0x383   :  { %v768_v1 = vadd.f32 %v985_v18, %v672_v33  ;;  %v759_v2 = vpop.f32.mrb[21].mxu1 }
 0x384   :  { %v760_v3 = vadd.f32 %v759_v2, %v672_v33  ;;  %v986_v4 = vpop.f32.mrb[22].mxu1 }
 0x385   :  { %813 = vst.msk [vmem:[%s1248_s3 + $0x30] sm:$0xff] %vm806_vm5, %v768_v1  ;;  %v771_v5 = vadd.f32 %v986_v4, %v672_v33  ;;  %v762_v6 = vpop.f32.mrb[23].mxu1 }
 0x386   :  { %811 = vst.msk [vmem:[%s1248_s3 + $0x20] sm:$0xff] %vm806_vm5, %v760_v3  ;;  %v763_v7 = vadd.f32 %v762_v6, %v672_v33 }
 0x387   :  { %814 = vst.msk [vmem:[%s1248_s3 + $0x38] sm:$0xff] %vm806_vm5, %v771_v5 }
 0x388   :  { %812 = vst.msk [vmem:[%s1248_s3 + $0x28] sm:$0xff] %vm806_vm5, %v763_v7 }
 0x38a   :  { %v989_v8 = vpop.f32.mrb[24].mxu1 }
 0x38b   :  { %v784_v9 = vadd.f32 %v989_v8, %v672_v33  ;;  %v775_v10 = vpop.f32.mrb[25].mxu1 }
 0x38c   :  { %v776_v11 = vadd.f32 %v775_v10, %v672_v33  ;;  %v990_v12 = vpop.f32.mrb[26].mxu1 }
 0x38d   :  { %817 = vst.msk [vmem:[%s1248_s3 + $0x50] sm:$0xff] %vm806_vm5, %v784_v9  ;;  %v787_v13 = vadd.f32 %v990_v12, %v672_v33  ;;  %v778_v14 = vpop.f32.mrb[27].mxu1 }
 0x38e   :  { %815 = vst.msk [vmem:[%s1248_s3 + $0x40] sm:$0xff] %vm806_vm5, %v776_v11  ;;  %v779_v15 = vadd.f32 %v778_v14, %v672_v33 }
 0x38f   :  { %818 = vst.msk [vmem:[%s1248_s3 + $0x58] sm:$0xff] %vm806_vm5, %v787_v13 }
 0x390   :  { %816 = vst.msk [vmem:[%s1248_s3 + $0x48] sm:$0xff] %vm806_vm5, %v779_v15 }
 0x392   :  { %v993_v17 = vpop.f32.mrb[28].mxu1 }
 0x393   :  { %v800_v20 = vadd.f32 %v993_v17, %v672_v33  ;;  %v791_v21 = vpop.f32.mrb[29].mxu1 }
 0x394   :  { %v792_v22 = vadd.f32 %v791_v21, %v672_v33  ;;  %v994_v23 = vpop.f32.mrb[30].mxu1 }
 0x395   :  { %821 = vst.msk [vmem:[%s1248_s3 + $0x70] sm:$0xff] %vm806_vm5, %v800_v20  ;;  %v803_v24 = vadd.f32 %v994_v23, %v672_v33  ;;  %v794_v25 = vpop.f32.mrb[31].mxu1 }
 0x396   :  { %819 = vst.msk [vmem:[%s1248_s3 + $0x60] sm:$0xff] %vm806_vm5, %v792_v22  ;;  %v795_v26 = vadd.f32 %v794_v25, %v672_v33 }
 0x397   :  { %822 = vst.msk [vmem:[%s1248_s3 + $0x78] sm:$0xff] %vm806_vm5, %v803_v24 }
 0x398   :  { %820 = vst.msk [vmem:[%s1248_s3 + $0x68] sm:$0xff] %vm806_vm5, %v795_v26 }

</bundles_post_ra>
